<compile_context>
chip_gen: v7x
topology: tpu7x:2x2x1
jax: 0.10.0
libtpu: 0.0.40
codegen_flags: <defaults>
</compile_context>

<pallas_src>
import functools

import jax
import jax.numpy as jnp
from jax.experimental import pallas as pl
from jax.experimental.pallas import tpu as pltpu


# ----------------------------------------------------------------------------
# Fused kernel: player MLP -> stacked LSTM (time-major) -> output MLP + BN(eval)
# ----------------------------------------------------------------------------

def _fused_kernel(*refs, T, B, hidden_dim, lstm_layers):
    # ref layout:
    #   0: ball_tm   (T*B, 2)       time-major flattened
    #   1: players_tm(T*B, 4)
    #   2..5: player-FC  w1 (4,4), b1 (1,4), w2 (4,pos), b2 (1,pos)
    #   6..6+3L-1: per LSTM layer (w_ih_t, w_hh_t, bias), gate blocks [i|f|o|g]
    #   next 8: ofc1_w, ofc1_b, bn_gamma, bn_beta, bn_mean, bn_var, ofc2_w, ofc2_b
    #   then: o_ref (B, 2*output_size), seq_sc scratch (T*B, H)
    n_in = 6 + 3 * lstm_layers + 8
    (ball_ref, players_ref, pfc1w_ref, pfc1b_ref, pfc2w_ref, pfc2b_ref) = refs[:6]
    lstm_refs = refs[6:6 + 3 * lstm_layers]
    (ofc1w_ref, ofc1b_ref, gamma_ref, beta_ref, mean_ref, var_ref,
     ofc2w_ref, ofc2b_ref) = refs[6 + 3 * lstm_layers:n_in]
    o_ref = refs[n_in]
    seq_sc = refs[n_in + 1]

    f32 = jnp.float32
    H = hidden_dim

    # ---- player MLP (folded preamble): Linear(4,4) -> ReLU -> Linear(4,pos) ----
    ball = ball_ref[...]                                            # (T*B, 2)
    pp = players_ref[...]                                           # (T*B, 4)
    pp = jnp.maximum(
        jnp.dot(pp, pfc1w_ref[...], preferred_element_type=f32) + pfc1b_ref[...],
        0.0)
    pp = jnp.dot(pp, pfc2w_ref[...], preferred_element_type=f32) + pfc2b_ref[...]

    # ---- stacked LSTM, time-major, recurrence fully unrolled in-kernel ----
    last_h = None
    for l in range(lstm_layers):
        wih = lstm_refs[3 * l][...]                                 # (in, 4H)
        whh = lstm_refs[3 * l + 1][...]                             # (H, 4H)
        b = lstm_refs[3 * l + 2][...]                               # (1, 4H)

        # Hoisted input projection: one (T*B, in) x (in, 4H) matmul; the bias
        # broadcast also happens exactly once, outside the time loop.
        if l == 0:
            # Distribute x @ W_ih over the [ball | player_feat] concat so the
            # concatenated LSTM input never needs to be materialized.
            xproj = (jnp.dot(ball, wih[:2, :], preferred_element_type=f32)
                     + jnp.dot(pp, wih[2:, :], preferred_element_type=f32)
                     + b)                                           # (T*B, 4H)
        else:
            xproj = jnp.dot(seq_sc[...], wih, preferred_element_type=f32) + b

        h = jnp.zeros((B, H), f32)
        c = jnp.zeros((B, H), f32)
        emit_seq = l < lstm_layers - 1                              # last layer: only final h
        for t in range(T):                                          # static unroll (T small)
            g = (xproj[t * B:(t + 1) * B, :]
                 + jnp.dot(h, whh, preferred_element_type=f32))     # (B, 4H)
            # Gate layout [i | f | o | g]: one contiguous sigmoid slab + one tanh slab.
            sg = jax.nn.sigmoid(g[:, :3 * H])                       # (B, 3H)
            gc = jnp.tanh(g[:, 3 * H:])                             # (B, H)
            c = sg[:, H:2 * H] * c + sg[:, :H] * gc
            h = sg[:, 2 * H:3 * H] * jnp.tanh(c)
            if emit_seq:
                seq_sc[t * B:(t + 1) * B, :] = h                    # stays in VMEM
        last_h = h
        # TODO(synk): LSTM inter-layer dropout is training-only; identity at inference.

    # ---- output head: Linear -> ReLU -> BatchNorm1d(eval) -> Linear ----
    h1 = jnp.maximum(
        jnp.dot(last_h, ofc1w_ref[...], preferred_element_type=f32) + ofc1b_ref[...],
        0.0)
    hn = ((h1 - mean_ref[...]) * jax.lax.rsqrt(var_ref[...] + 1e-5)
          * gamma_ref[...] + beta_ref[...])
    o_ref[...] = (jnp.dot(hn, ofc2w_ref[...], preferred_element_type=f32)
                  + ofc2b_ref[...])


# ----------------------------------------------------------------------------
# Wrapper (single pallas_call for the whole forward pass)
# ----------------------------------------------------------------------------

def position_trajectory_predictor(params, ball_positions, players_positions,
                                  output_size, hidden_dim, lstm_layers):
    B, T, _ = ball_positions.shape
    # time-major flatten: row t*B + b  <->  (batch b, time t)
    ball_tm = jnp.transpose(ball_positions, (1, 0, 2)).reshape(T * B, -1)
    players_tm = jnp.transpose(players_positions, (1, 0, 2)).reshape(T * B, -1)

    args = [ball_tm, players_tm,
            params["pfc1_w"], params["pfc1_b"], params["pfc2_w"], params["pfc2_b"]]
    for l in range(lstm_layers):
        args += [params[f"w_ih_t_{l}"], params[f"w_hh_t_{l}"], params[f"b_{l}"]]
    args += [params["ofc1_w"], params["ofc1_b"], params["bn_gamma"],
             params["bn_beta"], params["bn_mean"], params["bn_var"],
             params["ofc2_w"], params["ofc2_b"]]

    kernel = functools.partial(_fused_kernel, T=T, B=B,
                               hidden_dim=hidden_dim, lstm_layers=lstm_layers)
    return pl.pallas_call(
        kernel,
        out_shape=jax.ShapeDtypeStruct((B, 2 * output_size), jnp.float32),
        scratch_shapes=[pltpu.VMEM((T * B, hidden_dim), jnp.float32)],
    )(*args)


# ----------------------------------------------------------------------------
# Parameters.
#   * Linear / LSTM weights stored pre-transposed: (in, out).
#   * LSTM biases pre-summed (b_ih + b_hh).
#   * LSTM gate blocks stored in order [i | f | o | g] (a column permutation of
#     PyTorch's [i | f | g | o]); when importing real PyTorch weights, permute
#     the 4H gate blocks once at load time.
# ----------------------------------------------------------------------------

def init_params(key, output_size, position_dim, hidden_dim, lstm_layers):
    def uni(k, shape, fan_in):
        bound = 1.0 / jnp.sqrt(float(fan_in))
        return jax.random.uniform(k, shape, jnp.float32, -bound, bound)

    keys = jax.random.split(key, 8 + 4 * lstm_layers)
    p = {}
    # player FC
    p["pfc1_w"] = uni(keys[0], (4, 4), 4)
    p["pfc1_b"] = uni(keys[1], (1, 4), 4)
    p["pfc2_w"] = uni(keys[2], (4, position_dim), 4)
    p["pfc2_b"] = uni(keys[3], (1, position_dim), 4)
    # LSTM layers (gate blocks [i | f | o | g])
    in_dim = 2 + position_dim
    for l in range(lstm_layers):
        li = in_dim if l == 0 else hidden_dim
        kk = keys[4 + 4 * l: 8 + 4 * l]
        p[f"w_ih_t_{l}"] = uni(kk[0], (li, 4 * hidden_dim), hidden_dim)
        p[f"w_hh_t_{l}"] = uni(kk[1], (hidden_dim, 4 * hidden_dim), hidden_dim)
        b_ih = uni(kk[2], (4 * hidden_dim,), hidden_dim)
        b_hh = uni(kk[3], (4 * hidden_dim,), hidden_dim)
        p[f"b_{l}"] = (b_ih + b_hh)[None, :]          # (1, 4H)
    # output FC
    ko = keys[4 + 4 * lstm_layers:]
    p["ofc1_w"] = uni(ko[0], (hidden_dim, hidden_dim), hidden_dim)
    p["ofc1_b"] = uni(ko[1], (1, hidden_dim), hidden_dim)
    p["ofc2_w"] = uni(ko[2], (hidden_dim, 2 * output_size), hidden_dim)
    p["ofc2_b"] = uni(ko[3], (1, 2 * output_size), hidden_dim)
    # BatchNorm1d (eval mode, default running stats)
    p["bn_gamma"] = jnp.ones((1, hidden_dim), jnp.float32)
    p["bn_beta"] = jnp.zeros((1, hidden_dim), jnp.float32)
    p["bn_mean"] = jnp.zeros((1, hidden_dim), jnp.float32)
    p["bn_var"] = jnp.ones((1, hidden_dim), jnp.float32)
    return p


# ----------------------------------------------------------------------------
# Pure-JAX reference (same [i|f|o|g] gate-block convention as the params)
# ----------------------------------------------------------------------------

def _reference(params, ball_positions, players_positions, hidden_dim,
               lstm_layers):
    B, T, _ = ball_positions.shape
    pp = players_positions
    pp = jnp.maximum(pp @ params["pfc1_w"] + params["pfc1_b"][0], 0.0)
    pp = pp @ params["pfc2_w"] + params["pfc2_b"][0]
    x = jnp.concatenate([ball_positions, pp], axis=-1)         # (B, T, in)

    H = hidden_dim
    for l in range(lstm_layers):
        h = jnp.zeros((B, H), jnp.float32)
        c = jnp.zeros((B, H), jnp.float32)
        outs = []
        for t in range(T):
            gates = x[:, t, :] @ params[f"w_ih_t_{l}"] + h @ params[f"w_hh_t_{l}"] \
                    + params[f"b_{l}"]
            i_g = jax.nn.sigmoid(gates[:, 0 * H:1 * H])
            f_g = jax.nn.sigmoid(gates[:, 1 * H:2 * H])
            o_g = jax.nn.sigmoid(gates[:, 2 * H:3 * H])
            g_g = jnp.tanh(gates[:, 3 * H:4 * H])
            c = f_g * c + i_g * g_g
            h = o_g * jnp.tanh(c)
            outs.append(h)
        x = jnp.stack(outs, axis=1)                            # (B, T, H)

    hlast = x[:, -1, :]
    h1 = jnp.maximum(hlast @ params["ofc1_w"] + params["ofc1_b"][0], 0.0)
    hn = (h1 - params["bn_mean"][0]) * jax.lax.rsqrt(params["bn_var"][0] + 1e-5) \
         * params["bn_gamma"][0] + params["bn_beta"][0]
    return hn @ params["ofc2_w"] + params["ofc2_b"][0]


# ----------------------------------------------------------------------------

if __name__ == "__main__":
    B, T = 2, 8
    output_size = 5
    position_dim = 4
    hidden_dim = 32
    lstm_layers = 2

    root = jax.random.PRNGKey(0)
    kp, kb, kq = jax.random.split(root, 3)
    params = init_params(kp, output_size, position_dim, hidden_dim, lstm_layers)

    ball_positions = jax.random.normal(kb, (B, T, 2), jnp.float32)
    players_positions = jax.random.normal(kq, (B, T, 4), jnp.float32)

    out = position_trajectory_predictor(params, ball_positions,
                                        players_positions, output_size,
                                        hidden_dim, lstm_layers)
    out = jax.block_until_ready(out)

    ref = _reference(params, ball_positions, players_positions, hidden_dim,
                     lstm_layers)

    assert out.shape == (B, 2 * output_size), out.shape
    assert jnp.allclose(out, ref, atol=1e-3, rtol=1e-3), (out, ref)
    print("KERNEL_OK")
</pallas_src>

<mosaic_0001>
module attributes {stable_mosaic.version = 11 : i64} {
  func.func @_fused_kernel(%arg0: memref<16x2xf32, #tpu.memory_space<vmem>>, %arg1: memref<16x4xf32, #tpu.memory_space<vmem>>, %arg2: memref<4x4xf32, #tpu.memory_space<vmem>>, %arg3: memref<1x4xf32, #tpu.memory_space<vmem>>, %arg4: memref<4x4xf32, #tpu.memory_space<vmem>>, %arg5: memref<1x4xf32, #tpu.memory_space<vmem>>, %arg6: memref<6x128xf32, #tpu.memory_space<vmem>>, %arg7: memref<32x128xf32, #tpu.memory_space<vmem>>, %arg8: memref<1x128xf32, #tpu.memory_space<vmem>>, %arg9: memref<32x128xf32, #tpu.memory_space<vmem>>, %arg10: memref<32x128xf32, #tpu.memory_space<vmem>>, %arg11: memref<1x128xf32, #tpu.memory_space<vmem>>, %arg12: memref<32x32xf32, #tpu.memory_space<vmem>>, %arg13: memref<1x32xf32, #tpu.memory_space<vmem>>, %arg14: memref<1x32xf32, #tpu.memory_space<vmem>>, %arg15: memref<1x32xf32, #tpu.memory_space<vmem>>, %arg16: memref<1x32xf32, #tpu.memory_space<vmem>>, %arg17: memref<1x32xf32, #tpu.memory_space<vmem>>, %arg18: memref<32x10xf32, #tpu.memory_space<vmem>>, %arg19: memref<1x10xf32, #tpu.memory_space<vmem>>, %arg20: memref<2x10xf32, #tpu.memory_space<vmem>>, %arg21: memref<16x32xf32, #tpu.memory_space<vmem>>) attributes {dimension_semantics = [], scalar_prefetch = 0 : i64, scratch_operands = 1 : i64, tpu.core_type = #tpu.core_type<tc>} {
    %c0 = arith.constant 0 : index
    %c0_0 = arith.constant 0 : index
    %0 = vector.load %arg0[%c0, %c0_0] : memref<16x2xf32, #tpu.memory_space<vmem>>, vector<16x2xf32>
    %c0_1 = arith.constant 0 : index
    %c0_2 = arith.constant 0 : index
    %1 = vector.load %arg1[%c0_1, %c0_2] : memref<16x4xf32, #tpu.memory_space<vmem>>, vector<16x4xf32>
    %c0_3 = arith.constant 0 : index
    %c0_4 = arith.constant 0 : index
    %2 = vector.load %arg2[%c0_3, %c0_4] : memref<4x4xf32, #tpu.memory_space<vmem>>, vector<4x4xf32>
    %cst = arith.constant dense<0.000000e+00> : vector<16x4xf32>
    %3 = tpu.matmul %1, %2, %cst {dimension_numbers = #tpu.dot_dimension_numbers<[1], [0], [0], [1], [0, 0, 1, 1], [], []>} : vector<16x4xf32>, vector<4x4xf32>, vector<16x4xf32> -> vector<16x4xf32>
    %c0_5 = arith.constant 0 : index
    %c0_6 = arith.constant 0 : index
    %4 = vector.load %arg3[%c0_5, %c0_6] : memref<1x4xf32, #tpu.memory_space<vmem>>, vector<1x4xf32>
    %5 = vector.broadcast %4 : vector<1x4xf32> to vector<16x4xf32>
    %6 = arith.addf %3, %5 : vector<16x4xf32>
    %cst_7 = arith.constant 0.000000e+00 : f32
    %7 = vector.broadcast %cst_7 : f32 to vector<16x4xf32>
    %8 = arith.maximumf %6, %7 : vector<16x4xf32>
    %c0_8 = arith.constant 0 : index
    %c0_9 = arith.constant 0 : index
    %9 = vector.load %arg4[%c0_8, %c0_9] : memref<4x4xf32, #tpu.memory_space<vmem>>, vector<4x4xf32>
    %cst_10 = arith.constant dense<0.000000e+00> : vector<16x4xf32>
    %10 = tpu.matmul %8, %9, %cst_10 {dimension_numbers = #tpu.dot_dimension_numbers<[1], [0], [0], [1], [0, 0, 1, 1], [], []>} : vector<16x4xf32>, vector<4x4xf32>, vector<16x4xf32> -> vector<16x4xf32>
    %c0_11 = arith.constant 0 : index
    %c0_12 = arith.constant 0 : index
    %11 = vector.load %arg5[%c0_11, %c0_12] : memref<1x4xf32, #tpu.memory_space<vmem>>, vector<1x4xf32>
    %12 = vector.broadcast %11 : vector<1x4xf32> to vector<16x4xf32>
    %13 = arith.addf %10, %12 : vector<16x4xf32>
    %c0_13 = arith.constant 0 : index
    %c0_14 = arith.constant 0 : index
    %14 = vector.load %arg6[%c0_13, %c0_14] : memref<6x128xf32, #tpu.memory_space<vmem>>, vector<6x128xf32>
    %c0_15 = arith.constant 0 : index
    %c0_16 = arith.constant 0 : index
    %15 = vector.load %arg7[%c0_15, %c0_16] : memref<32x128xf32, #tpu.memory_space<vmem>>, vector<32x128xf32>
    %c0_17 = arith.constant 0 : index
    %c0_18 = arith.constant 0 : index
    %16 = vector.load %arg8[%c0_17, %c0_18] : memref<1x128xf32, #tpu.memory_space<vmem>>, vector<1x128xf32>
    %17 = vector.extract_strided_slice %14 {offsets = [0, 0], sizes = [2, 128], strides = [1, 1]} : vector<6x128xf32> to vector<2x128xf32>
    %cst_19 = arith.constant dense<0.000000e+00> : vector<16x128xf32>
    %18 = tpu.matmul %0, %17, %cst_19 {dimension_numbers = #tpu.dot_dimension_numbers<[1], [0], [0], [1], [0, 0, 1, 1], [], []>} : vector<16x2xf32>, vector<2x128xf32>, vector<16x128xf32> -> vector<16x128xf32>
    %19 = vector.extract_strided_slice %14 {offsets = [2, 0], sizes = [4, 128], strides = [1, 1]} : vector<6x128xf32> to vector<4x128xf32>
    %cst_20 = arith.constant dense<0.000000e+00> : vector<16x128xf32>
    %20 = tpu.matmul %13, %19, %cst_20 {dimension_numbers = #tpu.dot_dimension_numbers<[1], [0], [0], [1], [0, 0, 1, 1], [], []>} : vector<16x4xf32>, vector<4x128xf32>, vector<16x128xf32> -> vector<16x128xf32>
    %21 = arith.addf %18, %20 : vector<16x128xf32>
    %22 = vector.broadcast %16 : vector<1x128xf32> to vector<16x128xf32>
    %23 = arith.addf %21, %22 : vector<16x128xf32>
    %cst_21 = arith.constant 0.000000e+00 : f32
    %24 = vector.broadcast %cst_21 : f32 to vector<2x32xf32>
    %cst_22 = arith.constant 0.000000e+00 : f32
    %25 = vector.broadcast %cst_22 : f32 to vector<2x32xf32>
    %26 = vector.extract_strided_slice %23 {offsets = [0, 0], sizes = [2, 128], strides = [1, 1]} : vector<16x128xf32> to vector<2x128xf32>
    %cst_23 = arith.constant dense<0.000000e+00> : vector<2x128xf32>
    %27 = tpu.matmul %24, %15, %cst_23 {dimension_numbers = #tpu.dot_dimension_numbers<[1], [0], [0], [1], [0, 0, 1, 1], [], []>} : vector<2x32xf32>, vector<32x128xf32>, vector<2x128xf32> -> vector<2x128xf32>
    %28 = arith.addf %26, %27 : vector<2x128xf32>
    %29 = vector.extract_strided_slice %28 {offsets = [0, 0], sizes = [2, 96], strides = [1, 1]} : vector<2x128xf32> to vector<2x96xf32>
    %30 = arith.negf %29 : vector<2x96xf32>
    %31 = math.exp %30 : vector<2x96xf32>
    %cst_24 = arith.constant 1.000000e+00 : f32
    %32 = vector.broadcast %cst_24 : f32 to vector<2x96xf32>
    %33 = arith.addf %32, %31 : vector<2x96xf32>
    %34 = arith.divf %32, %33 : vector<2x96xf32>
    %35 = vector.extract_strided_slice %28 {offsets = [0, 96], sizes = [2, 32], strides = [1, 1]} : vector<2x128xf32> to vector<2x32xf32>
    %36 = math.tanh %35 : vector<2x32xf32>
    %37 = vector.extract_strided_slice %34 {offsets = [0, 32], sizes = [2, 32], strides = [1, 1]} : vector<2x96xf32> to vector<2x32xf32>
    %38 = arith.mulf %37, %25 : vector<2x32xf32>
    %39 = vector.extract_strided_slice %34 {offsets = [0, 0], sizes = [2, 32], strides = [1, 1]} : vector<2x96xf32> to vector<2x32xf32>
    %40 = arith.mulf %39, %36 : vector<2x32xf32>
    %41 = arith.addf %38, %40 : vector<2x32xf32>
    %42 = vector.extract_strided_slice %34 {offsets = [0, 64], sizes = [2, 32], strides = [1, 1]} : vector<2x96xf32> to vector<2x32xf32>
    %43 = math.tanh %41 : vector<2x32xf32>
    %44 = arith.mulf %42, %43 : vector<2x32xf32>
    %c0_25 = arith.constant 0 : index
    %c0_26 = arith.constant 0 : index
    %45 = vector.load %arg21[%c0_25, %c0_26] : memref<16x32xf32, #tpu.memory_space<vmem>>, vector<2x32xf32>
    tpu.vector_store %arg21[%c0_25, %c0_26], %44 {strides = array<i32>} : memref<16x32xf32, #tpu.memory_space<vmem>>, vector<2x32xf32>,
    %46 = vector.extract_strided_slice %23 {offsets = [2, 0], sizes = [2, 128], strides = [1, 1]} : vector<16x128xf32> to vector<2x128xf32>
    %cst_27 = arith.constant dense<0.000000e+00> : vector<2x128xf32>
    %47 = tpu.matmul %44, %15, %cst_27 {dimension_numbers = #tpu.dot_dimension_numbers<[1], [0], [0], [1], [0, 0, 1, 1], [], []>} : vector<2x32xf32>, vector<32x128xf32>, vector<2x128xf32> -> vector<2x128xf32>
    %48 = arith.addf %46, %47 : vector<2x128xf32>
    %49 = vector.extract_strided_slice %48 {offsets = [0, 0], sizes = [2, 96], strides = [1, 1]} : vector<2x128xf32> to vector<2x96xf32>
    %50 = arith.negf %49 : vector<2x96xf32>
    %51 = math.exp %50 : vector<2x96xf32>
    %cst_28 = arith.constant 1.000000e+00 : f32
    %52 = vector.broadcast %cst_28 : f32 to vector<2x96xf32>
    %53 = arith.addf %52, %51 : vector<2x96xf32>
    %54 = arith.divf %52, %53 : vector<2x96xf32>
    %55 = vector.extract_strided_slice %48 {offsets = [0, 96], sizes = [2, 32], strides = [1, 1]} : vector<2x128xf32> to vector<2x32xf32>
    %56 = math.tanh %55 : vector<2x32xf32>
    %57 = vector.extract_strided_slice %54 {offsets = [0, 32], sizes = [2, 32], strides = [1, 1]} : vector<2x96xf32> to vector<2x32xf32>
    %58 = arith.mulf %57, %41 : vector<2x32xf32>
    %59 = vector.extract_strided_slice %54 {offsets = [0, 0], sizes = [2, 32], strides = [1, 1]} : vector<2x96xf32> to vector<2x32xf32>
    %60 = arith.mulf %59, %56 : vector<2x32xf32>
    %61 = arith.addf %58, %60 : vector<2x32xf32>
    %62 = vector.extract_strided_slice %54 {offsets = [0, 64], sizes = [2, 32], strides = [1, 1]} : vector<2x96xf32> to vector<2x32xf32>
    %63 = math.tanh %61 : vector<2x32xf32>
    %64 = arith.mulf %62, %63 : vector<2x32xf32>
    %c2 = arith.constant 2 : index
    %c0_29 = arith.constant 0 : index
    %65 = vector.load %arg21[%c2, %c0_29] : memref<16x32xf32, #tpu.memory_space<vmem>>, vector<2x32xf32>
    tpu.vector_store %arg21[%c2, %c0_29], %64 {strides = array<i32>} : memref<16x32xf32, #tpu.memory_space<vmem>>, vector<2x32xf32>,
    %66 = vector.extract_strided_slice %23 {offsets = [4, 0], sizes = [2, 128], strides = [1, 1]} : vector<16x128xf32> to vector<2x128xf32>
    %cst_30 = arith.constant dense<0.000000e+00> : vector<2x128xf32>
    %67 = tpu.matmul %64, %15, %cst_30 {dimension_numbers = #tpu.dot_dimension_numbers<[1], [0], [0], [1], [0, 0, 1, 1], [], []>} : vector<2x32xf32>, vector<32x128xf32>, vector<2x128xf32> -> vector<2x128xf32>
    %68 = arith.addf %66, %67 : vector<2x128xf32>
    %69 = vector.extract_strided_slice %68 {offsets = [0, 0], sizes = [2, 96], strides = [1, 1]} : vector<2x128xf32> to vector<2x96xf32>
    %70 = arith.negf %69 : vector<2x96xf32>
    %71 = math.exp %70 : vector<2x96xf32>
    %cst_31 = arith.constant 1.000000e+00 : f32
    %72 = vector.broadcast %cst_31 : f32 to vector<2x96xf32>
    %73 = arith.addf %72, %71 : vector<2x96xf32>
    %74 = arith.divf %72, %73 : vector<2x96xf32>
    %75 = vector.extract_strided_slice %68 {offsets = [0, 96], sizes = [2, 32], strides = [1, 1]} : vector<2x128xf32> to vector<2x32xf32>
    %76 = math.tanh %75 : vector<2x32xf32>
    %77 = vector.extract_strided_slice %74 {offsets = [0, 32], sizes = [2, 32], strides = [1, 1]} : vector<2x96xf32> to vector<2x32xf32>
    %78 = arith.mulf %77, %61 : vector<2x32xf32>
    %79 = vector.extract_strided_slice %74 {offsets = [0, 0], sizes = [2, 32], strides = [1, 1]} : vector<2x96xf32> to vector<2x32xf32>
    %80 = arith.mulf %79, %76 : vector<2x32xf32>
    %81 = arith.addf %78, %80 : vector<2x32xf32>
    %82 = vector.extract_strided_slice %74 {offsets = [0, 64], sizes = [2, 32], strides = [1, 1]} : vector<2x96xf32> to vector<2x32xf32>
    %83 = math.tanh %81 : vector<2x32xf32>
    %84 = arith.mulf %82, %83 : vector<2x32xf32>
    %c4 = arith.constant 4 : index
    %c0_32 = arith.constant 0 : index
    %85 = vector.load %arg21[%c4, %c0_32] : memref<16x32xf32, #tpu.memory_space<vmem>>, vector<2x32xf32>
    tpu.vector_store %arg21[%c4, %c0_32], %84 {strides = array<i32>} : memref<16x32xf32, #tpu.memory_space<vmem>>, vector<2x32xf32>,
    %86 = vector.extract_strided_slice %23 {offsets = [6, 0], sizes = [2, 128], strides = [1, 1]} : vector<16x128xf32> to vector<2x128xf32>
    %cst_33 = arith.constant dense<0.000000e+00> : vector<2x128xf32>
    %87 = tpu.matmul %84, %15, %cst_33 {dimension_numbers = #tpu.dot_dimension_numbers<[1], [0], [0], [1], [0, 0, 1, 1], [], []>} : vector<2x32xf32>, vector<32x128xf32>, vector<2x128xf32> -> vector<2x128xf32>
    %88 = arith.addf %86, %87 : vector<2x128xf32>
    %89 = vector.extract_strided_slice %88 {offsets = [0, 0], sizes = [2, 96], strides = [1, 1]} : vector<2x128xf32> to vector<2x96xf32>
    %90 = arith.negf %89 : vector<2x96xf32>
    %91 = math.exp %90 : vector<2x96xf32>
    %cst_34 = arith.constant 1.000000e+00 : f32
    %92 = vector.broadcast %cst_34 : f32 to vector<2x96xf32>
    %93 = arith.addf %92, %91 : vector<2x96xf32>
    %94 = arith.divf %92, %93 : vector<2x96xf32>
    %95 = vector.extract_strided_slice %88 {offsets = [0, 96], sizes = [2, 32], strides = [1, 1]} : vector<2x128xf32> to vector<2x32xf32>
    %96 = math.tanh %95 : vector<2x32xf32>
    %97 = vector.extract_strided_slice %94 {offsets = [0, 32], sizes = [2, 32], strides = [1, 1]} : vector<2x96xf32> to vector<2x32xf32>
    %98 = arith.mulf %97, %81 : vector<2x32xf32>
    %99 = vector.extract_strided_slice %94 {offsets = [0, 0], sizes = [2, 32], strides = [1, 1]} : vector<2x96xf32> to vector<2x32xf32>
    %100 = arith.mulf %99, %96 : vector<2x32xf32>
    %101 = arith.addf %98, %100 : vector<2x32xf32>
    %102 = vector.extract_strided_slice %94 {offsets = [0, 64], sizes = [2, 32], strides = [1, 1]} : vector<2x96xf32> to vector<2x32xf32>
    %103 = math.tanh %101 : vector<2x32xf32>
    %104 = arith.mulf %102, %103 : vector<2x32xf32>
    %c6 = arith.constant 6 : index
    %c0_35 = arith.constant 0 : index
    %105 = vector.load %arg21[%c6, %c0_35] : memref<16x32xf32, #tpu.memory_space<vmem>>, vector<2x32xf32>
    tpu.vector_store %arg21[%c6, %c0_35], %104 {strides = array<i32>} : memref<16x32xf32, #tpu.memory_space<vmem>>, vector<2x32xf32>,
    %106 = vector.extract_strided_slice %23 {offsets = [8, 0], sizes = [2, 128], strides = [1, 1]} : vector<16x128xf32> to vector<2x128xf32>
    %cst_36 = arith.constant dense<0.000000e+00> : vector<2x128xf32>
    %107 = tpu.matmul %104, %15, %cst_36 {dimension_numbers = #tpu.dot_dimension_numbers<[1], [0], [0], [1], [0, 0, 1, 1], [], []>} : vector<2x32xf32>, vector<32x128xf32>, vector<2x128xf32> -> vector<2x128xf32>
    %108 = arith.addf %106, %107 : vector<2x128xf32>
    %109 = vector.extract_strided_slice %108 {offsets = [0, 0], sizes = [2, 96], strides = [1, 1]} : vector<2x128xf32> to vector<2x96xf32>
    %110 = arith.negf %109 : vector<2x96xf32>
    %111 = math.exp %110 : vector<2x96xf32>
    %cst_37 = arith.constant 1.000000e+00 : f32
    %112 = vector.broadcast %cst_37 : f32 to vector<2x96xf32>
    %113 = arith.addf %112, %111 : vector<2x96xf32>
    %114 = arith.divf %112, %113 : vector<2x96xf32>
    %115 = vector.extract_strided_slice %108 {offsets = [0, 96], sizes = [2, 32], strides = [1, 1]} : vector<2x128xf32> to vector<2x32xf32>
    %116 = math.tanh %115 : vector<2x32xf32>
    %117 = vector.extract_strided_slice %114 {offsets = [0, 32], sizes = [2, 32], strides = [1, 1]} : vector<2x96xf32> to vector<2x32xf32>
    %118 = arith.mulf %117, %101 : vector<2x32xf32>
    %119 = vector.extract_strided_slice %114 {offsets = [0, 0], sizes = [2, 32], strides = [1, 1]} : vector<2x96xf32> to vector<2x32xf32>
    %120 = arith.mulf %119, %116 : vector<2x32xf32>
    %121 = arith.addf %118, %120 : vector<2x32xf32>
    %122 = vector.extract_strided_slice %114 {offsets = [0, 64], sizes = [2, 32], strides = [1, 1]} : vector<2x96xf32> to vector<2x32xf32>
    %123 = math.tanh %121 : vector<2x32xf32>
    %124 = arith.mulf %122, %123 : vector<2x32xf32>
    %c8 = arith.constant 8 : index
    %c0_38 = arith.constant 0 : index
    %125 = vector.load %arg21[%c8, %c0_38] : memref<16x32xf32, #tpu.memory_space<vmem>>, vector<2x32xf32>
    tpu.vector_store %arg21[%c8, %c0_38], %124 {strides = array<i32>} : memref<16x32xf32, #tpu.memory_space<vmem>>, vector<2x32xf32>,
    %126 = vector.extract_strided_slice %23 {offsets = [10, 0], sizes = [2, 128], strides = [1, 1]} : vector<16x128xf32> to vector<2x128xf32>
    %cst_39 = arith.constant dense<0.000000e+00> : vector<2x128xf32>
    %127 = tpu.matmul %124, %15, %cst_39 {dimension_numbers = #tpu.dot_dimension_numbers<[1], [0], [0], [1], [0, 0, 1, 1], [], []>} : vector<2x32xf32>, vector<32x128xf32>, vector<2x128xf32> -> vector<2x128xf32>
    %128 = arith.addf %126, %127 : vector<2x128xf32>
    %129 = vector.extract_strided_slice %128 {offsets = [0, 0], sizes = [2, 96], strides = [1, 1]} : vector<2x128xf32> to vector<2x96xf32>
    %130 = arith.negf %129 : vector<2x96xf32>
    %131 = math.exp %130 : vector<2x96xf32>
    %cst_40 = arith.constant 1.000000e+00 : f32
    %132 = vector.broadcast %cst_40 : f32 to vector<2x96xf32>
    %133 = arith.addf %132, %131 : vector<2x96xf32>
    %134 = arith.divf %132, %133 : vector<2x96xf32>
    %135 = vector.extract_strided_slice %128 {offsets = [0, 96], sizes = [2, 32], strides = [1, 1]} : vector<2x128xf32> to vector<2x32xf32>
    %136 = math.tanh %135 : vector<2x32xf32>
    %137 = vector.extract_strided_slice %134 {offsets = [0, 32], sizes = [2, 32], strides = [1, 1]} : vector<2x96xf32> to vector<2x32xf32>
    %138 = arith.mulf %137, %121 : vector<2x32xf32>
    %139 = vector.extract_strided_slice %134 {offsets = [0, 0], sizes = [2, 32], strides = [1, 1]} : vector<2x96xf32> to vector<2x32xf32>
    %140 = arith.mulf %139, %136 : vector<2x32xf32>
    %141 = arith.addf %138, %140 : vector<2x32xf32>
    %142 = vector.extract_strided_slice %134 {offsets = [0, 64], sizes = [2, 32], strides = [1, 1]} : vector<2x96xf32> to vector<2x32xf32>
    %143 = math.tanh %141 : vector<2x32xf32>
    %144 = arith.mulf %142, %143 : vector<2x32xf32>
    %c10 = arith.constant 10 : index
    %c0_41 = arith.constant 0 : index
    %145 = vector.load %arg21[%c10, %c0_41] : memref<16x32xf32, #tpu.memory_space<vmem>>, vector<2x32xf32>
    tpu.vector_store %arg21[%c10, %c0_41], %144 {strides = array<i32>} : memref<16x32xf32, #tpu.memory_space<vmem>>, vector<2x32xf32>,
    %146 = vector.extract_strided_slice %23 {offsets = [12, 0], sizes = [2, 128], strides = [1, 1]} : vector<16x128xf32> to vector<2x128xf32>
    %cst_42 = arith.constant dense<0.000000e+00> : vector<2x128xf32>
    %147 = tpu.matmul %144, %15, %cst_42 {dimension_numbers = #tpu.dot_dimension_numbers<[1], [0], [0], [1], [0, 0, 1, 1], [], []>} : vector<2x32xf32>, vector<32x128xf32>, vector<2x128xf32> -> vector<2x128xf32>
    %148 = arith.addf %146, %147 : vector<2x128xf32>
    %149 = vector.extract_strided_slice %148 {offsets = [0, 0], sizes = [2, 96], strides = [1, 1]} : vector<2x128xf32> to vector<2x96xf32>
    %150 = arith.negf %149 : vector<2x96xf32>
    %151 = math.exp %150 : vector<2x96xf32>
    %cst_43 = arith.constant 1.000000e+00 : f32
    %152 = vector.broadcast %cst_43 : f32 to vector<2x96xf32>
    %153 = arith.addf %152, %151 : vector<2x96xf32>
    %154 = arith.divf %152, %153 : vector<2x96xf32>
    %155 = vector.extract_strided_slice %148 {offsets = [0, 96], sizes = [2, 32], strides = [1, 1]} : vector<2x128xf32> to vector<2x32xf32>
    %156 = math.tanh %155 : vector<2x32xf32>
    %157 = vector.extract_strided_slice %154 {offsets = [0, 32], sizes = [2, 32], strides = [1, 1]} : vector<2x96xf32> to vector<2x32xf32>
    %158 = arith.mulf %157, %141 : vector<2x32xf32>
    %159 = vector.extract_strided_slice %154 {offsets = [0, 0], sizes = [2, 32], strides = [1, 1]} : vector<2x96xf32> to vector<2x32xf32>
    %160 = arith.mulf %159, %156 : vector<2x32xf32>
    %161 = arith.addf %158, %160 : vector<2x32xf32>
    %162 = vector.extract_strided_slice %154 {offsets = [0, 64], sizes = [2, 32], strides = [1, 1]} : vector<2x96xf32> to vector<2x32xf32>
    %163 = math.tanh %161 : vector<2x32xf32>
    %164 = arith.mulf %162, %163 : vector<2x32xf32>
    %c12 = arith.constant 12 : index
    %c0_44 = arith.constant 0 : index
    %165 = vector.load %arg21[%c12, %c0_44] : memref<16x32xf32, #tpu.memory_space<vmem>>, vector<2x32xf32>
    tpu.vector_store %arg21[%c12, %c0_44], %164 {strides = array<i32>} : memref<16x32xf32, #tpu.memory_space<vmem>>, vector<2x32xf32>,
    %166 = vector.extract_strided_slice %23 {offsets = [14, 0], sizes = [2, 128], strides = [1, 1]} : vector<16x128xf32> to vector<2x128xf32>
    %cst_45 = arith.constant dense<0.000000e+00> : vector<2x128xf32>
    %167 = tpu.matmul %164, %15, %cst_45 {dimension_numbers = #tpu.dot_dimension_numbers<[1], [0], [0], [1], [0, 0, 1, 1], [], []>} : vector<2x32xf32>, vector<32x128xf32>, vector<2x128xf32> -> vector<2x128xf32>
    %168 = arith.addf %166, %167 : vector<2x128xf32>
    %169 = vector.extract_strided_slice %168 {offsets = [0, 0], sizes = [2, 96], strides = [1, 1]} : vector<2x128xf32> to vector<2x96xf32>
    %170 = arith.negf %169 : vector<2x96xf32>
    %171 = math.exp %170 : vector<2x96xf32>
    %cst_46 = arith.constant 1.000000e+00 : f32
    %172 = vector.broadcast %cst_46 : f32 to vector<2x96xf32>
    %173 = arith.addf %172, %171 : vector<2x96xf32>
    %174 = arith.divf %172, %173 : vector<2x96xf32>
    %175 = vector.extract_strided_slice %168 {offsets = [0, 96], sizes = [2, 32], strides = [1, 1]} : vector<2x128xf32> to vector<2x32xf32>
    %176 = math.tanh %175 : vector<2x32xf32>
    %177 = vector.extract_strided_slice %174 {offsets = [0, 32], sizes = [2, 32], strides = [1, 1]} : vector<2x96xf32> to vector<2x32xf32>
    %178 = arith.mulf %177, %161 : vector<2x32xf32>
    %179 = vector.extract_strided_slice %174 {offsets = [0, 0], sizes = [2, 32], strides = [1, 1]} : vector<2x96xf32> to vector<2x32xf32>
    %180 = arith.mulf %179, %176 : vector<2x32xf32>
    %181 = arith.addf %178, %180 : vector<2x32xf32>
    %182 = vector.extract_strided_slice %174 {offsets = [0, 64], sizes = [2, 32], strides = [1, 1]} : vector<2x96xf32> to vector<2x32xf32>
    %183 = math.tanh %181 : vector<2x32xf32>
    %184 = arith.mulf %182, %183 : vector<2x32xf32>
    %c14 = arith.constant 14 : index
    %c0_47 = arith.constant 0 : index
    %185 = vector.load %arg21[%c14, %c0_47] : memref<16x32xf32, #tpu.memory_space<vmem>>, vector<2x32xf32>
    tpu.vector_store %arg21[%c14, %c0_47], %184 {strides = array<i32>} : memref<16x32xf32, #tpu.memory_space<vmem>>, vector<2x32xf32>,
    %c0_48 = arith.constant 0 : index
    %c0_49 = arith.constant 0 : index
    %186 = vector.load %arg9[%c0_48, %c0_49] : memref<32x128xf32, #tpu.memory_space<vmem>>, vector<32x128xf32>
    %c0_50 = arith.constant 0 : index
    %c0_51 = arith.constant 0 : index
    %187 = vector.load %arg10[%c0_50, %c0_51] : memref<32x128xf32, #tpu.memory_space<vmem>>, vector<32x128xf32>
    %c0_52 = arith.constant 0 : index
    %c0_53 = arith.constant 0 : index
    %188 = vector.load %arg11[%c0_52, %c0_53] : memref<1x128xf32, #tpu.memory_space<vmem>>, vector<1x128xf32>
    %c0_54 = arith.constant 0 : index
    %c0_55 = arith.constant 0 : index
    %189 = vector.load %arg21[%c0_54, %c0_55] : memref<16x32xf32, #tpu.memory_space<vmem>>, vector<16x32xf32>
    %cst_56 = arith.constant dense<0.000000e+00> : vector<16x128xf32>
    %190 = tpu.matmul %189, %186, %cst_56 {dimension_numbers = #tpu.dot_dimension_numbers<[1], [0], [0], [1], [0, 0, 1, 1], [], []>} : vector<16x32xf32>, vector<32x128xf32>, vector<16x128xf32> -> vector<16x128xf32>
    %191 = vector.broadcast %188 : vector<1x128xf32> to vector<16x128xf32>
    %192 = arith.addf %190, %191 : vector<16x128xf32>
    %cst_57 = arith.constant 0.000000e+00 : f32
    %193 = vector.broadcast %cst_57 : f32 to vector<2x32xf32>
    %cst_58 = arith.constant 0.000000e+00 : f32
    %194 = vector.broadcast %cst_58 : f32 to vector<2x32xf32>
    %195 = vector.extract_strided_slice %192 {offsets = [0, 0], sizes = [2, 128], strides = [1, 1]} : vector<16x128xf32> to vector<2x128xf32>
    %cst_59 = arith.constant dense<0.000000e+00> : vector<2x128xf32>
    %196 = tpu.matmul %193, %187, %cst_59 {dimension_numbers = #tpu.dot_dimension_numbers<[1], [0], [0], [1], [0, 0, 1, 1], [], []>} : vector<2x32xf32>, vector<32x128xf32>, vector<2x128xf32> -> vector<2x128xf32>
    %197 = arith.addf %195, %196 : vector<2x128xf32>
    %198 = vector.extract_strided_slice %197 {offsets = [0, 0], sizes = [2, 96], strides = [1, 1]} : vector<2x128xf32> to vector<2x96xf32>
    %199 = arith.negf %198 : vector<2x96xf32>
    %200 = math.exp %199 : vector<2x96xf32>
    %cst_60 = arith.constant 1.000000e+00 : f32
    %201 = vector.broadcast %cst_60 : f32 to vector<2x96xf32>
    %202 = arith.addf %201, %200 : vector<2x96xf32>
    %203 = arith.divf %201, %202 : vector<2x96xf32>
    %204 = vector.extract_strided_slice %197 {offsets = [0, 96], sizes = [2, 32], strides = [1, 1]} : vector<2x128xf32> to vector<2x32xf32>
    %205 = math.tanh %204 : vector<2x32xf32>
    %206 = vector.extract_strided_slice %203 {offsets = [0, 32], sizes = [2, 32], strides = [1, 1]} : vector<2x96xf32> to vector<2x32xf32>
    %207 = arith.mulf %206, %194 : vector<2x32xf32>
    %208 = vector.extract_strided_slice %203 {offsets = [0, 0], sizes = [2, 32], strides = [1, 1]} : vector<2x96xf32> to vector<2x32xf32>
    %209 = arith.mulf %208, %205 : vector<2x32xf32>
    %210 = arith.addf %207, %209 : vector<2x32xf32>
    %211 = vector.extract_strided_slice %203 {offsets = [0, 64], sizes = [2, 32], strides = [1, 1]} : vector<2x96xf32> to vector<2x32xf32>
    %212 = math.tanh %210 : vector<2x32xf32>
    %213 = arith.mulf %211, %212 : vector<2x32xf32>
    %214 = vector.extract_strided_slice %192 {offsets = [2, 0], sizes = [2, 128], strides = [1, 1]} : vector<16x128xf32> to vector<2x128xf32>
    %cst_61 = arith.constant dense<0.000000e+00> : vector<2x128xf32>
    %215 = tpu.matmul %213, %187, %cst_61 {dimension_numbers = #tpu.dot_dimension_numbers<[1], [0], [0], [1], [0, 0, 1, 1], [], []>} : vector<2x32xf32>, vector<32x128xf32>, vector<2x128xf32> -> vector<2x128xf32>
    %216 = arith.addf %214, %215 : vector<2x128xf32>
    %217 = vector.extract_strided_slice %216 {offsets = [0, 0], sizes = [2, 96], strides = [1, 1]} : vector<2x128xf32> to vector<2x96xf32>
    %218 = arith.negf %217 : vector<2x96xf32>
    %219 = math.exp %218 : vector<2x96xf32>
    %cst_62 = arith.constant 1.000000e+00 : f32
    %220 = vector.broadcast %cst_62 : f32 to vector<2x96xf32>
    %221 = arith.addf %220, %219 : vector<2x96xf32>
    %222 = arith.divf %220, %221 : vector<2x96xf32>
    %223 = vector.extract_strided_slice %216 {offsets = [0, 96], sizes = [2, 32], strides = [1, 1]} : vector<2x128xf32> to vector<2x32xf32>
    %224 = math.tanh %223 : vector<2x32xf32>
    %225 = vector.extract_strided_slice %222 {offsets = [0, 32], sizes = [2, 32], strides = [1, 1]} : vector<2x96xf32> to vector<2x32xf32>
    %226 = arith.mulf %225, %210 : vector<2x32xf32>
    %227 = vector.extract_strided_slice %222 {offsets = [0, 0], sizes = [2, 32], strides = [1, 1]} : vector<2x96xf32> to vector<2x32xf32>
    %228 = arith.mulf %227, %224 : vector<2x32xf32>
    %229 = arith.addf %226, %228 : vector<2x32xf32>
    %230 = vector.extract_strided_slice %222 {offsets = [0, 64], sizes = [2, 32], strides = [1, 1]} : vector<2x96xf32> to vector<2x32xf32>
    %231 = math.tanh %229 : vector<2x32xf32>
    %232 = arith.mulf %230, %231 : vector<2x32xf32>
    %233 = vector.extract_strided_slice %192 {offsets = [4, 0], sizes = [2, 128], strides = [1, 1]} : vector<16x128xf32> to vector<2x128xf32>
    %cst_63 = arith.constant dense<0.000000e+00> : vector<2x128xf32>
    %234 = tpu.matmul %232, %187, %cst_63 {dimension_numbers = #tpu.dot_dimension_numbers<[1], [0], [0], [1], [0, 0, 1, 1], [], []>} : vector<2x32xf32>, vector<32x128xf32>, vector<2x128xf32> -> vector<2x128xf32>
    %235 = arith.addf %233, %234 : vector<2x128xf32>
    %236 = vector.extract_strided_slice %235 {offsets = [0, 0], sizes = [2, 96], strides = [1, 1]} : vector<2x128xf32> to vector<2x96xf32>
    %237 = arith.negf %236 : vector<2x96xf32>
    %238 = math.exp %237 : vector<2x96xf32>
    %cst_64 = arith.constant 1.000000e+00 : f32
    %239 = vector.broadcast %cst_64 : f32 to vector<2x96xf32>
    %240 = arith.addf %239, %238 : vector<2x96xf32>
    %241 = arith.divf %239, %240 : vector<2x96xf32>
    %242 = vector.extract_strided_slice %235 {offsets = [0, 96], sizes = [2, 32], strides = [1, 1]} : vector<2x128xf32> to vector<2x32xf32>
    %243 = math.tanh %242 : vector<2x32xf32>
    %244 = vector.extract_strided_slice %241 {offsets = [0, 32], sizes = [2, 32], strides = [1, 1]} : vector<2x96xf32> to vector<2x32xf32>
    %245 = arith.mulf %244, %229 : vector<2x32xf32>
    %246 = vector.extract_strided_slice %241 {offsets = [0, 0], sizes = [2, 32], strides = [1, 1]} : vector<2x96xf32> to vector<2x32xf32>
    %247 = arith.mulf %246, %243 : vector<2x32xf32>
    %248 = arith.addf %245, %247 : vector<2x32xf32>
    %249 = vector.extract_strided_slice %241 {offsets = [0, 64], sizes = [2, 32], strides = [1, 1]} : vector<2x96xf32> to vector<2x32xf32>
    %250 = math.tanh %248 : vector<2x32xf32>
    %251 = arith.mulf %249, %250 : vector<2x32xf32>
    %252 = vector.extract_strided_slice %192 {offsets = [6, 0], sizes = [2, 128], strides = [1, 1]} : vector<16x128xf32> to vector<2x128xf32>
    %cst_65 = arith.constant dense<0.000000e+00> : vector<2x128xf32>
    %253 = tpu.matmul %251, %187, %cst_65 {dimension_numbers = #tpu.dot_dimension_numbers<[1], [0], [0], [1], [0, 0, 1, 1], [], []>} : vector<2x32xf32>, vector<32x128xf32>, vector<2x128xf32> -> vector<2x128xf32>
    %254 = arith.addf %252, %253 : vector<2x128xf32>
    %255 = vector.extract_strided_slice %254 {offsets = [0, 0], sizes = [2, 96], strides = [1, 1]} : vector<2x128xf32> to vector<2x96xf32>
    %256 = arith.negf %255 : vector<2x96xf32>
    %257 = math.exp %256 : vector<2x96xf32>
    %cst_66 = arith.constant 1.000000e+00 : f32
    %258 = vector.broadcast %cst_66 : f32 to vector<2x96xf32>
    %259 = arith.addf %258, %257 : vector<2x96xf32>
    %260 = arith.divf %258, %259 : vector<2x96xf32>
    %261 = vector.extract_strided_slice %254 {offsets = [0, 96], sizes = [2, 32], strides = [1, 1]} : vector<2x128xf32> to vector<2x32xf32>
    %262 = math.tanh %261 : vector<2x32xf32>
    %263 = vector.extract_strided_slice %260 {offsets = [0, 32], sizes = [2, 32], strides = [1, 1]} : vector<2x96xf32> to vector<2x32xf32>
    %264 = arith.mulf %263, %248 : vector<2x32xf32>
    %265 = vector.extract_strided_slice %260 {offsets = [0, 0], sizes = [2, 32], strides = [1, 1]} : vector<2x96xf32> to vector<2x32xf32>
    %266 = arith.mulf %265, %262 : vector<2x32xf32>
    %267 = arith.addf %264, %266 : vector<2x32xf32>
    %268 = vector.extract_strided_slice %260 {offsets = [0, 64], sizes = [2, 32], strides = [1, 1]} : vector<2x96xf32> to vector<2x32xf32>
    %269 = math.tanh %267 : vector<2x32xf32>
    %270 = arith.mulf %268, %269 : vector<2x32xf32>
    %271 = vector.extract_strided_slice %192 {offsets = [8, 0], sizes = [2, 128], strides = [1, 1]} : vector<16x128xf32> to vector<2x128xf32>
    %cst_67 = arith.constant dense<0.000000e+00> : vector<2x128xf32>
    %272 = tpu.matmul %270, %187, %cst_67 {dimension_numbers = #tpu.dot_dimension_numbers<[1], [0], [0], [1], [0, 0, 1, 1], [], []>} : vector<2x32xf32>, vector<32x128xf32>, vector<2x128xf32> -> vector<2x128xf32>
    %273 = arith.addf %271, %272 : vector<2x128xf32>
    %274 = vector.extract_strided_slice %273 {offsets = [0, 0], sizes = [2, 96], strides = [1, 1]} : vector<2x128xf32> to vector<2x96xf32>
    %275 = arith.negf %274 : vector<2x96xf32>
    %276 = math.exp %275 : vector<2x96xf32>
    %cst_68 = arith.constant 1.000000e+00 : f32
    %277 = vector.broadcast %cst_68 : f32 to vector<2x96xf32>
    %278 = arith.addf %277, %276 : vector<2x96xf32>
    %279 = arith.divf %277, %278 : vector<2x96xf32>
    %280 = vector.extract_strided_slice %273 {offsets = [0, 96], sizes = [2, 32], strides = [1, 1]} : vector<2x128xf32> to vector<2x32xf32>
    %281 = math.tanh %280 : vector<2x32xf32>
    %282 = vector.extract_strided_slice %279 {offsets = [0, 32], sizes = [2, 32], strides = [1, 1]} : vector<2x96xf32> to vector<2x32xf32>
    %283 = arith.mulf %282, %267 : vector<2x32xf32>
    %284 = vector.extract_strided_slice %279 {offsets = [0, 0], sizes = [2, 32], strides = [1, 1]} : vector<2x96xf32> to vector<2x32xf32>
    %285 = arith.mulf %284, %281 : vector<2x32xf32>
    %286 = arith.addf %283, %285 : vector<2x32xf32>
    %287 = vector.extract_strided_slice %279 {offsets = [0, 64], sizes = [2, 32], strides = [1, 1]} : vector<2x96xf32> to vector<2x32xf32>
    %288 = math.tanh %286 : vector<2x32xf32>
    %289 = arith.mulf %287, %288 : vector<2x32xf32>
    %290 = vector.extract_strided_slice %192 {offsets = [10, 0], sizes = [2, 128], strides = [1, 1]} : vector<16x128xf32> to vector<2x128xf32>
    %cst_69 = arith.constant dense<0.000000e+00> : vector<2x128xf32>
    %291 = tpu.matmul %289, %187, %cst_69 {dimension_numbers = #tpu.dot_dimension_numbers<[1], [0], [0], [1], [0, 0, 1, 1], [], []>} : vector<2x32xf32>, vector<32x128xf32>, vector<2x128xf32> -> vector<2x128xf32>
    %292 = arith.addf %290, %291 : vector<2x128xf32>
    %293 = vector.extract_strided_slice %292 {offsets = [0, 0], sizes = [2, 96], strides = [1, 1]} : vector<2x128xf32> to vector<2x96xf32>
    %294 = arith.negf %293 : vector<2x96xf32>
    %295 = math.exp %294 : vector<2x96xf32>
    %cst_70 = arith.constant 1.000000e+00 : f32
    %296 = vector.broadcast %cst_70 : f32 to vector<2x96xf32>
    %297 = arith.addf %296, %295 : vector<2x96xf32>
    %298 = arith.divf %296, %297 : vector<2x96xf32>
    %299 = vector.extract_strided_slice %292 {offsets = [0, 96], sizes = [2, 32], strides = [1, 1]} : vector<2x128xf32> to vector<2x32xf32>
    %300 = math.tanh %299 : vector<2x32xf32>
    %301 = vector.extract_strided_slice %298 {offsets = [0, 32], sizes = [2, 32], strides = [1, 1]} : vector<2x96xf32> to vector<2x32xf32>
    %302 = arith.mulf %301, %286 : vector<2x32xf32>
    %303 = vector.extract_strided_slice %298 {offsets = [0, 0], sizes = [2, 32], strides = [1, 1]} : vector<2x96xf32> to vector<2x32xf32>
    %304 = arith.mulf %303, %300 : vector<2x32xf32>
    %305 = arith.addf %302, %304 : vector<2x32xf32>
    %306 = vector.extract_strided_slice %298 {offsets = [0, 64], sizes = [2, 32], strides = [1, 1]} : vector<2x96xf32> to vector<2x32xf32>
    %307 = math.tanh %305 : vector<2x32xf32>
    %308 = arith.mulf %306, %307 : vector<2x32xf32>
    %309 = vector.extract_strided_slice %192 {offsets = [12, 0], sizes = [2, 128], strides = [1, 1]} : vector<16x128xf32> to vector<2x128xf32>
    %cst_71 = arith.constant dense<0.000000e+00> : vector<2x128xf32>
    %310 = tpu.matmul %308, %187, %cst_71 {dimension_numbers = #tpu.dot_dimension_numbers<[1], [0], [0], [1], [0, 0, 1, 1], [], []>} : vector<2x32xf32>, vector<32x128xf32>, vector<2x128xf32> -> vector<2x128xf32>
    %311 = arith.addf %309, %310 : vector<2x128xf32>
    %312 = vector.extract_strided_slice %311 {offsets = [0, 0], sizes = [2, 96], strides = [1, 1]} : vector<2x128xf32> to vector<2x96xf32>
    %313 = arith.negf %312 : vector<2x96xf32>
    %314 = math.exp %313 : vector<2x96xf32>
    %cst_72 = arith.constant 1.000000e+00 : f32
    %315 = vector.broadcast %cst_72 : f32 to vector<2x96xf32>
    %316 = arith.addf %315, %314 : vector<2x96xf32>
    %317 = arith.divf %315, %316 : vector<2x96xf32>
    %318 = vector.extract_strided_slice %311 {offsets = [0, 96], sizes = [2, 32], strides = [1, 1]} : vector<2x128xf32> to vector<2x32xf32>
    %319 = math.tanh %318 : vector<2x32xf32>
    %320 = vector.extract_strided_slice %317 {offsets = [0, 32], sizes = [2, 32], strides = [1, 1]} : vector<2x96xf32> to vector<2x32xf32>
    %321 = arith.mulf %320, %305 : vector<2x32xf32>
    %322 = vector.extract_strided_slice %317 {offsets = [0, 0], sizes = [2, 32], strides = [1, 1]} : vector<2x96xf32> to vector<2x32xf32>
    %323 = arith.mulf %322, %319 : vector<2x32xf32>
    %324 = arith.addf %321, %323 : vector<2x32xf32>
    %325 = vector.extract_strided_slice %317 {offsets = [0, 64], sizes = [2, 32], strides = [1, 1]} : vector<2x96xf32> to vector<2x32xf32>
    %326 = math.tanh %324 : vector<2x32xf32>
    %327 = arith.mulf %325, %326 : vector<2x32xf32>
    %328 = vector.extract_strided_slice %192 {offsets = [14, 0], sizes = [2, 128], strides = [1, 1]} : vector<16x128xf32> to vector<2x128xf32>
    %cst_73 = arith.constant dense<0.000000e+00> : vector<2x128xf32>
    %329 = tpu.matmul %327, %187, %cst_73 {dimension_numbers = #tpu.dot_dimension_numbers<[1], [0], [0], [1], [0, 0, 1, 1], [], []>} : vector<2x32xf32>, vector<32x128xf32>, vector<2x128xf32> -> vector<2x128xf32>
    %330 = arith.addf %328, %329 : vector<2x128xf32>
    %331 = vector.extract_strided_slice %330 {offsets = [0, 0], sizes = [2, 96], strides = [1, 1]} : vector<2x128xf32> to vector<2x96xf32>
    %332 = arith.negf %331 : vector<2x96xf32>
    %333 = math.exp %332 : vector<2x96xf32>
    %cst_74 = arith.constant 1.000000e+00 : f32
    %334 = vector.broadcast %cst_74 : f32 to vector<2x96xf32>
    %335 = arith.addf %334, %333 : vector<2x96xf32>
    %336 = arith.divf %334, %335 : vector<2x96xf32>
    %337 = vector.extract_strided_slice %330 {offsets = [0, 96], sizes = [2, 32], strides = [1, 1]} : vector<2x128xf32> to vector<2x32xf32>
    %338 = math.tanh %337 : vector<2x32xf32>
    %339 = vector.extract_strided_slice %336 {offsets = [0, 32], sizes = [2, 32], strides = [1, 1]} : vector<2x96xf32> to vector<2x32xf32>
    %340 = arith.mulf %339, %324 : vector<2x32xf32>
    %341 = vector.extract_strided_slice %336 {offsets = [0, 0], sizes = [2, 32], strides = [1, 1]} : vector<2x96xf32> to vector<2x32xf32>
    %342 = arith.mulf %341, %338 : vector<2x32xf32>
    %343 = arith.addf %340, %342 : vector<2x32xf32>
    %344 = vector.extract_strided_slice %336 {offsets = [0, 64], sizes = [2, 32], strides = [1, 1]} : vector<2x96xf32> to vector<2x32xf32>
    %345 = math.tanh %343 : vector<2x32xf32>
    %346 = arith.mulf %344, %345 : vector<2x32xf32>
    %c0_75 = arith.constant 0 : index
    %c0_76 = arith.constant 0 : index
    %347 = vector.load %arg12[%c0_75, %c0_76] : memref<32x32xf32, #tpu.memory_space<vmem>>, vector<32x32xf32>
    %cst_77 = arith.constant dense<0.000000e+00> : vector<2x32xf32>
    %348 = tpu.matmul %346, %347, %cst_77 {dimension_numbers = #tpu.dot_dimension_numbers<[1], [0], [0], [1], [0, 0, 1, 1], [], []>} : vector<2x32xf32>, vector<32x32xf32>, vector<2x32xf32> -> vector<2x32xf32>
    %c0_78 = arith.constant 0 : index
    %c0_79 = arith.constant 0 : index
    %349 = vector.load %arg13[%c0_78, %c0_79] : memref<1x32xf32, #tpu.memory_space<vmem>>, vector<1x32xf32>
    %350 = vector.broadcast %349 : vector<1x32xf32> to vector<2x32xf32>
    %351 = arith.addf %348, %350 : vector<2x32xf32>
    %cst_80 = arith.constant 0.000000e+00 : f32
    %352 = vector.broadcast %cst_80 : f32 to vector<2x32xf32>
    %353 = arith.maximumf %351, %352 : vector<2x32xf32>
    %c0_81 = arith.constant 0 : index
    %c0_82 = arith.constant 0 : index
    %354 = vector.load %arg16[%c0_81, %c0_82] : memref<1x32xf32, #tpu.memory_space<vmem>>, vector<1x32xf32>
    %355 = vector.broadcast %354 : vector<1x32xf32> to vector<2x32xf32>
    %356 = arith.subf %353, %355 : vector<2x32xf32>
    %c0_83 = arith.constant 0 : index
    %c0_84 = arith.constant 0 : index
    %357 = vector.load %arg17[%c0_83, %c0_84] : memref<1x32xf32, #tpu.memory_space<vmem>>, vector<1x32xf32>
    %cst_85 = arith.constant 9.99999974E-6 : f32
    %358 = vector.broadcast %cst_85 : f32 to vector<1x32xf32>
    %359 = arith.addf %357, %358 : vector<1x32xf32>
    %360 = math.rsqrt %359 : vector<1x32xf32>
    %361 = vector.broadcast %360 : vector<1x32xf32> to vector<2x32xf32>
    %362 = arith.mulf %356, %361 : vector<2x32xf32>
    %c0_86 = arith.constant 0 : index
    %c0_87 = arith.constant 0 : index
    %363 = vector.load %arg14[%c0_86, %c0_87] : memref<1x32xf32, #tpu.memory_space<vmem>>, vector<1x32xf32>
    %364 = vector.broadcast %363 : vector<1x32xf32> to vector<2x32xf32>
    %365 = arith.mulf %362, %364 : vector<2x32xf32>
    %c0_88 = arith.constant 0 : index
    %c0_89 = arith.constant 0 : index
    %366 = vector.load %arg15[%c0_88, %c0_89] : memref<1x32xf32, #tpu.memory_space<vmem>>, vector<1x32xf32>
    %367 = vector.broadcast %366 : vector<1x32xf32> to vector<2x32xf32>
    %368 = arith.addf %365, %367 : vector<2x32xf32>
    %c0_90 = arith.constant 0 : index
    %c0_91 = arith.constant 0 : index
    %369 = vector.load %arg18[%c0_90, %c0_91] : memref<32x10xf32, #tpu.memory_space<vmem>>, vector<32x10xf32>
    %cst_92 = arith.constant dense<0.000000e+00> : vector<2x10xf32>
    %370 = tpu.matmul %368, %369, %cst_92 {dimension_numbers = #tpu.dot_dimension_numbers<[1], [0], [0], [1], [0, 0, 1, 1], [], []>} : vector<2x32xf32>, vector<32x10xf32>, vector<2x10xf32> -> vector<2x10xf32>
    %c0_93 = arith.constant 0 : index
    %c0_94 = arith.constant 0 : index
    %371 = vector.load %arg19[%c0_93, %c0_94] : memref<1x10xf32, #tpu.memory_space<vmem>>, vector<1x10xf32>
    %372 = vector.broadcast %371 : vector<1x10xf32> to vector<2x10xf32>
    %373 = arith.addf %370, %372 : vector<2x10xf32>
    %c0_95 = arith.constant 0 : index
    %c0_96 = arith.constant 0 : index
    %374 = vector.load %arg20[%c0_95, %c0_96] : memref<2x10xf32, #tpu.memory_space<vmem>>, vector<2x10xf32>
    tpu.vector_store %arg20[%c0_95, %c0_96], %373 {strides = array<i32>} : memref<2x10xf32, #tpu.memory_space<vmem>>, vector<2x10xf32>,
    return
  }
}

</mosaic_0001>

<bundles_post_ra>
// kernel: tpu_custom_call.1
= control target key start
LH: loop header
LB: loop body
LE: loop exit
PB: predicated region body
PF: predicated region fallthrough
CT: control target
= control target key end

     0   :  { %s4060_s0 = inlined_call_operand.vmem [shape: f32[16,2], index: 0, kind: input, shape index: {}]   ;;  %s4061_s1 = inlined_call_operand.vmem [shape: f32[16,4], index: 1, kind: input, shape index: {}]   ;;  %s4062_s2 = inlined_call_operand.hbm [shape: f32[4,4], index: 2, kind: input, shape index: {}]   ;;  %s4063_s3 = inlined_call_operand.vmem [shape: f32[1,4], index: 3, kind: input, shape index: {}]   ;;  %s4064_s4 = inlined_call_operand.hbm [shape: f32[4,4], index: 4, kind: input, shape index: {}]   ;;  %s4065_s5 = inlined_call_operand.vmem [shape: f32[1,4], index: 5, kind: input, shape index: {}]   ;;  %s4066_s6 = inlined_call_operand.hbm [shape: f32[6,128], index: 6, kind: input, shape index: {}]   ;;  %s4067_s7 = inlined_call_operand.vmem [shape: f32[32,128], index: 7, kind: input, shape index: {}]   ;;  %s4068_s8 = inlined_call_operand.hbm [shape: f32[1,128], index: 8, kind: input, shape index: {}]   ;;  %s4069_s9 = inlined_call_operand.vmem [shape: f32[32,128], index: 9, kind: input, shape index: {}]   ;;  %s4070_s10 = inlined_call_operand.vmem [shape: f32[32,128], index: 10, kind: input, shape index: {}]   ;;  %s4071_s11 = inlined_call_operand.hbm [shape: f32[1,128], index: 11, kind: input, shape index: {}]   ;;  %s4072_s12 = inlined_call_operand.vmem [shape: f32[32,32], index: 12, kind: input, shape index: {}]   ;;  %s4073_s13 = inlined_call_operand.hbm [shape: f32[1,32], index: 13, kind: input, shape index: {}]   ;;  %s4074_s14 = inlined_call_operand.hbm [shape: f32[1,32], index: 14, kind: input, shape index: {}]   ;;  %s4075_s15 = inlined_call_operand.hbm [shape: f32[1,32], index: 15, kind: input, shape index: {}]   ;;  %s4076_s16 = inlined_call_operand.hbm [shape: f32[1,32], index: 16, kind: input, shape index: {}]   ;;  %s4077_s17 = inlined_call_operand.vmem [shape: f32[1,32], index: 17, kind: input, shape index: {}]   ;;  %s4078_s18 = inlined_call_operand.vmem [shape: f32[32,10], index: 18, kind: input, shape index: {}]   ;;  %s4079_s19 = inlined_call_operand.vmem [shape: f32[1,10], index: 19, kind: input, shape index: {}]   ;;  %s4080_s20 = inlined_call_operand.hbm [shape: f32[2,10], index: 20, kind: output, shape index: {}]  }
   0x1   :  { %4085 = sst [smem:[#allocation25_spill]] %s4060_s0 }
   0x2   :  { %4086 = sst [smem:[#allocation26_spill]] %s4061_s1 }
   0x3   :  { %4087 = sst [smem:[#allocation27_spill]] %s4062_s2 }
   0x4   :  { %4088 = sst [smem:[#allocation28_spill]] %s4063_s3 }
   0x5   :  { %4089 = sst [smem:[#allocation29_spill]] %s4064_s4 }
   0x6   :  { %25 = vsyncpa [#allocation4], 0 }
   0x7   :  { %26 = vsyncpa [#allocation7], 0 }
   0x8   :  { %27 = vsyncpa [#allocation10], 0 }
   0x9   :  { %28 = vsyncpa [#allocation13], 0 }
   0xa   :  { %29 = vsyncpa [#allocation16], 0 }
   0xb   :  { %30 = vsyncpa [#allocation5], 0  ;;  %s3473_s1 = smov [#allocation6]   ;;  %s3474_s23 = smov [#allocation9]  }
   0xc   :  { %s53_s22 = sshll.u32 %s3473_s1, 4  ;;  %s77_s24 = sshll.u32 %s3474_s23, 4  ;;  %s54_s22 = int_to_ptr.vmem [resolvable:$true] %s53_s22  ;;  %s78_s24 = int_to_ptr.vmem [resolvable:$true] %s77_s24 }
   0xd   :  { %s4090_s3 = sld [smem:[#allocation29_spill]] }
  0x13   :  { %s3241_s26 = scalar_lea.hbm %s4090_s3, 64 }
  0x14   :  { %p3242_p0 = scmp.ne.s32.totalorder %s4090_s3, %s3241_s26  ;;  %p3245_p1 = scmp.lt.u32.totalorder %s3241_s26, %s4090_s3 }
  0x16   :  { %p3247_p2 = pnand %p3245_p1, %p3242_p0 }
  0x18   :  { %3250 = shalt.err (!%p3247_p2)
}
  0x19   :  { %s3251_s30 = scalar_lea.vmem %s54_s22, 64  ;;  %p3256_p4 = scmp.lt.s32.totalorder %s54_s22, %s54_s22 }
  0x1a   :  { %p3252_p3 = scmp.ne.s32.totalorder %s54_s22, %s3251_s30  ;;  %p3257_p5 = scmp.lt.s32.totalorder %s3251_s30, %s3251_s30 }
  0x1c   :  { %p3258_p6 = por %p3257_p5, %p3256_p4 }
  0x1e   :  { %p3259_p7 = pnand %p3258_p6, %p3252_p3 }
  0x20   :  { %3262 = shalt.err (!%p3259_p7)
}
  0x21   :  { %56 = dma.hbm_to_vmem [thread:$0]  %s4090_s3, 64, %s54_s22, [#allocation7]  }
  0x22   :  { %s3263_s2 = scalar_lea.hbm %s4068_s8, 16 }
  0x23   :  { %p3264_p8 = scmp.ne.s32.totalorder %s4068_s8, %s3263_s2  ;;  %p3267_p9 = scmp.lt.u32.totalorder %s3263_s2, %s4068_s8 }
  0x25   :  { %p3269_p10 = pnand %p3267_p9, %p3264_p8 }
  0x27   :  { %3272 = shalt.err (!%p3269_p10)
}
  0x28   :  { %s3273_s4 = scalar_lea.vmem %s78_s24, 16  ;;  %s3277_s29 = scalar_lea.vmem %s78_s24, 32 }
  0x29   :  { %p3274_p11 = scmp.ne.s32.totalorder %s78_s24, %s3273_s4  ;;  %p3278_p12 = scmp.lt.s32.totalorder %s78_s24, %s78_s24 }
  0x2a   :  { %p3279_p13 = scmp.lt.s32.totalorder %s3277_s29, %s3273_s4 }
  0x2c   :  { %p3280_p0 = por %p3279_p13, %p3278_p12 }
  0x2e   :  { %p3281_p1 = pnand %p3280_p0, %p3274_p11 }
  0x30   :  { %3284 = shalt.err (!%p3281_p1)
}
  0x31   :  { %80 = dma.hbm_to_vmem [thread:$0]  %s4068_s8, 16, %s78_s24, [#allocation10]  }
  0x32   :  { %s3475_s30 = smov [#allocation12]   ;;  %s3476_s21 = smov [#allocation15]  }
  0x33   :  { %s103_s0 = sshll.u32 %s3475_s30, 4  ;;  %s123_s1 = sshll.u32 %s3476_s21, 4  ;;  %s104_s0 = int_to_ptr.vmem [resolvable:$true] %s103_s0  ;;  %s124_s1 = int_to_ptr.vmem [resolvable:$true] %s123_s1 }
  0x34   :  { %s3285_s25 = scalar_lea.hbm %s4073_s13, 16 }
  0x35   :  { %p3286_p2 = scmp.ne.s32.totalorder %s4073_s13, %s3285_s25  ;;  %p3289_p3 = scmp.lt.u32.totalorder %s3285_s25, %s4073_s13 }
  0x37   :  { %p3291_p4 = pnand %p3289_p3, %p3286_p2 }
  0x39   :  { %3294 = shalt.err (!%p3291_p4)
}
  0x3a   :  { %s3295_s8 = scalar_lea.vmem %s104_s0, 16  ;;  %s3299_s24 = scalar_lea.vmem %s104_s0, 32 }
  0x3b   :  { %p3296_p5 = scmp.ne.s32.totalorder %s104_s0, %s3295_s8  ;;  %p3300_p6 = scmp.lt.s32.totalorder %s104_s0, %s104_s0 }
  0x3c   :  { %p3301_p7 = scmp.lt.s32.totalorder %s3299_s24, %s3295_s8 }
  0x3e   :  { %p3302_p8 = por %p3301_p7, %p3300_p6 }
  0x40   :  { %p3303_p9 = pnand %p3302_p8, %p3296_p5 }
  0x42   :  { %3306 = shalt.err (!%p3303_p9)
}
  0x43   :  { %106 = dma.hbm_to_vmem [thread:$0]  %s4073_s13, 16, %s104_s0, [#allocation13]  }
  0x44   :  { %s3307_s21 = scalar_lea.hbm %s4075_s15, 16 }
  0x45   :  { %p3308_p10 = scmp.ne.s32.totalorder %s4075_s15, %s3307_s21  ;;  %p3311_p11 = scmp.lt.u32.totalorder %s3307_s21, %s4075_s15 }
  0x47   :  { %p3313_p12 = pnand %p3311_p11, %p3308_p10 }
  0x49   :  { %3316 = shalt.err (!%p3313_p12)
}
  0x4a   :  { %s3317_s26 = scalar_lea.vmem %s124_s1, 16  ;;  %s3321_s28 = scalar_lea.vmem %s124_s1, 32 }
  0x4b   :  { %p3318_p13 = scmp.ne.s32.totalorder %s124_s1, %s3317_s26  ;;  %p3322_p0 = scmp.lt.s32.totalorder %s124_s1, %s124_s1 }
  0x4c   :  { %p3323_p1 = scmp.lt.s32.totalorder %s3321_s28, %s3317_s26 }
  0x4e   :  { %p3324_p2 = por %p3323_p1, %p3322_p0 }
  0x50   :  { %p3325_p3 = pnand %p3324_p2, %p3318_p13 }
  0x52   :  { %3328 = shalt.err (!%p3325_p3)
}
  0x53   :  { %126 = dma.hbm_to_vmem [thread:$0]  %s4075_s15, 16, %s124_s1, [#allocation16]  }
  0x54   :  { %s3477_s4 = smov [#allocation3]   ;;  %s3478_s24 = smov [#allocation8]  }
  0x55   :  { %s41_s8 = sshll.u32 %s3477_s4, 4  ;;  %s65_s29 = sshll.u32 %s3478_s24, 4  ;;  %s42_s8 = int_to_ptr.vmem [resolvable:$true] %s41_s8  ;;  %s66_s29 = int_to_ptr.vmem [resolvable:$true] %s65_s29 }
  0x56   :  { %s4091_s30 = sld [smem:[#allocation27_spill]] }
  0x5c   :  { %s3329_s21 = scalar_lea.hbm %s4091_s30, 64 }
  0x5d   :  { %p3330_p4 = scmp.ne.s32.totalorder %s4091_s30, %s3329_s21  ;;  %p3333_p5 = scmp.lt.u32.totalorder %s3329_s21, %s4091_s30 }
  0x5f   :  { %p3335_p6 = pnand %p3333_p5, %p3330_p4 }
  0x61   :  { %3338 = shalt.err (!%p3335_p6)
}
  0x62   :  { %s3339_s15 = scalar_lea.vmem %s42_s8, 64  ;;  %p3344_p8 = scmp.lt.s32.totalorder %s42_s8, %s42_s8 }
  0x63   :  { %p3340_p7 = scmp.ne.s32.totalorder %s42_s8, %s3339_s15  ;;  %p3345_p9 = scmp.lt.s32.totalorder %s3339_s15, %s3339_s15 }
  0x65   :  { %p3346_p10 = por %p3345_p9, %p3344_p8 }
  0x67   :  { %p3347_p11 = pnand %p3346_p10, %p3340_p7 }
  0x69   :  { %3350 = shalt.err (!%p3347_p11)
}
  0x6a   :  { %44 = dma.hbm_to_vmem [thread:$0]  %s4091_s30, 64, %s42_s8, [#allocation4]  }
  0x6b   :  { %s3351_s0 = scalar_lea.hbm %s4066_s6, 128 }
  0x6c   :  { %p3352_p12 = scmp.ne.s32.totalorder %s4066_s6, %s3351_s0  ;;  %p3355_p13 = scmp.lt.u32.totalorder %s3351_s0, %s4066_s6 }
  0x6e   :  { %p3357_p0 = pnand %p3355_p13, %p3352_p12 }
  0x70   :  { %3360 = shalt.err (!%p3357_p0)
}
  0x71   :  { %s3361_s21 = scalar_lea.vmem %s66_s29, 128  ;;  %p3366_p2 = scmp.lt.s32.totalorder %s66_s29, %s66_s29 }
  0x72   :  { %p3362_p1 = scmp.ne.s32.totalorder %s66_s29, %s3361_s21  ;;  %p3367_p3 = scmp.lt.s32.totalorder %s3361_s21, %s3361_s21 }
  0x74   :  { %p3368_p4 = por %p3367_p3, %p3366_p2 }
  0x76   :  { %p3369_p5 = pnand %p3368_p4, %p3362_p1 }
  0x78   :  { %3372 = shalt.err (!%p3369_p5)
}
  0x79   :  { %68 = dma.hbm_to_vmem [thread:$0]  %s4066_s6, 128, %s66_s29, [#allocation7]  }
  0x7a   :  { %s3479_s23 = smov [#allocation11]   ;;  %s3480_s25 = smov [#allocation14]  }
  0x7b   :  { %s91_s2 = sshll.u32 %s3479_s23, 4  ;;  %s113_s27 = sshll.u32 %s3480_s25, 4  ;;  %s92_s2 = int_to_ptr.vmem [resolvable:$true] %s91_s2  ;;  %s114_s27 = int_to_ptr.vmem [resolvable:$true] %s113_s27 }
  0x7c   :  { %s3373_s26 = scalar_lea.hbm %s4071_s11, 16 }
  0x7d   :  { %p3374_p6 = scmp.ne.s32.totalorder %s4071_s11, %s3373_s26  ;;  %p3377_p7 = scmp.lt.u32.totalorder %s3373_s26, %s4071_s11 }
  0x7f   :  { %p3379_p8 = pnand %p3377_p7, %p3374_p6 }
  0x81   :  { %3382 = shalt.err (!%p3379_p8)
}
  0x82   :  { %s3383_s6 = scalar_lea.vmem %s92_s2, 16  ;;  %s3387_s29 = scalar_lea.vmem %s92_s2, 32 }
  0x83   :  { %p3384_p9 = scmp.ne.s32.totalorder %s92_s2, %s3383_s6  ;;  %p3388_p10 = scmp.lt.s32.totalorder %s92_s2, %s92_s2 }
  0x84   :  { %p3389_p11 = scmp.lt.s32.totalorder %s3387_s29, %s3383_s6 }
  0x86   :  { %p3390_p12 = por %p3389_p11, %p3388_p10 }
  0x88   :  { %p3391_p13 = pnand %p3390_p12, %p3384_p9 }
  0x8a   :  { %3394 = shalt.err (!%p3391_p13)
}
  0x8b   :  { %94 = dma.hbm_to_vmem [thread:$0]  %s4071_s11, 16, %s92_s2, [#allocation10]  }
  0x8c   :  { %s3395_s8 = scalar_lea.hbm %s4074_s14, 16 }
  0x8d   :  { %p3396_p0 = scmp.ne.s32.totalorder %s4074_s14, %s3395_s8  ;;  %p3399_p1 = scmp.lt.u32.totalorder %s3395_s8, %s4074_s14 }
  0x8f   :  { %p3401_p2 = pnand %p3399_p1, %p3396_p0 }
  0x91   :  { %3404 = shalt.err (!%p3401_p2)
}
  0x92   :  { %s3405_s1 = scalar_lea.vmem %s114_s27, 16  ;;  %s3409_s26 = scalar_lea.vmem %s114_s27, 32 }
  0x93   :  { %p3406_p3 = scmp.ne.s32.totalorder %s114_s27, %s3405_s1  ;;  %p3410_p4 = scmp.lt.s32.totalorder %s114_s27, %s114_s27 }
  0x94   :  { %p3411_p5 = scmp.lt.s32.totalorder %s3409_s26, %s3405_s1 }
  0x96   :  { %p3412_p6 = por %p3411_p5, %p3410_p4 }
  0x98   :  { %p3413_p7 = pnand %p3412_p6, %p3406_p3 }
  0x9a   :  { %3416 = shalt.err (!%p3413_p7)
}
  0x9b   :  { %116 = dma.hbm_to_vmem [thread:$0]  %s4074_s14, 16, %s114_s27, [#allocation13]  }
  0x9c   :  { %s3481_s28 = smov [#allocation17]   ;;  %s3417_s6 = scalar_lea.hbm %s4076_s16, 16 }
  0x9d   :  { %s133_s13 = sshll.u32 %s3481_s28, 4  ;;  %p3418_p8 = scmp.ne.s32.totalorder %s4076_s16, %s3417_s6  ;;  %s134_s13 = int_to_ptr.vmem [resolvable:$true] %s133_s13 }
  0x9e   :  { %p3421_p9 = scmp.lt.u32.totalorder %s3417_s6, %s4076_s16 }
  0xa0   :  { %p3423_p10 = pnand %p3421_p9, %p3418_p8 }
  0xa2   :  { %3426 = shalt.err (!%p3423_p10)
}
  0xa3   :  { %s3427_s21 = scalar_lea.vmem %s134_s13, 16  ;;  %s3431_s14 = scalar_lea.vmem %s134_s13, 32 }
  0xa4   :  { %p3428_p11 = scmp.ne.s32.totalorder %s134_s13, %s3427_s21  ;;  %p3432_p12 = scmp.lt.s32.totalorder %s134_s13, %s134_s13 }
  0xa5   :  { %p3433_p13 = scmp.lt.s32.totalorder %s3431_s14, %s3427_s21 }
  0xa7   :  { %p3434_p0 = por %p3433_p13, %p3432_p12 }
  0xa9   :  { %p3435_p1 = pnand %p3434_p0, %p3428_p11 }
  0xab   :  { %3438 = shalt.err (!%p3435_p1)
}
  0xac   :  { %136 = dma.hbm_to_vmem [thread:$0]  %s4076_s16, 16, %s134_s13, [#allocation16]  }
  0xad   :  { %3461 = dma.done.wait [#allocation4], 64  }
  0xae   :  { %3462 = vsyncadd [#allocation4], 4294967232 }
  0xaf   :  { %3463 = dma.done.wait [#allocation7], 192  }
  0xb0   :  { %3464 = vsyncadd [#allocation7], 4294967104 }
  0xb1   :  { %3465 = dma.done.wait [#allocation10], 32  }
  0xb2   :  { %3466 = vsyncadd [#allocation10], 4294967264 }
  0xb3   :  { %3467 = dma.done.wait [#allocation13], 32  }
  0xb4   :  { %3468 = vsyncadd [#allocation13], 4294967264 }
  0xb5   :  { %3469 = dma.done.wait [#allocation16], 32  }
  0xb6   :  { %3470 = vsyncadd [#allocation16], 4294967264  ;;  %vm189_vm0 = vcmask 1043456   ;;  %vm182_vm1 = vcmask 31744   ;;  %v174_v0 = vld [vmem:[#allocation3] sm:$0xf] }
  0xb7   :  { %s4092_s25 = sld [smem:[#allocation26_spill]]  ;;  %2749 = vmatprep.subr.msk.mxu0 %vm189_vm0, %v174_v0  ;;  %v270_v3 = vld [vmem:[#allocation6] sm:$0xf]  ;;  %s4093_s11 = sld [smem:[#allocation28_spill]]  ;;  %v362_v11 = vld [vmem:[#allocation8] sm:$0x3f] }
  0xb8   :  { %2750 = vmatpush3.msk.msra.mxu0 %vm189_vm0, %v174_v0  ;;  %2754 = vmatprep.subr.msk.mxu1 %vm189_vm0, %v270_v3  ;;  %v369_v12 = vrot.slane %v362_v11, 2  ;;  %vm460_vm2 = vcmask 1041408   ;;  %v363_v13 = vld [vmem:[%s4067_s7] sm:$0xff]  ;;  %v364_v14 = vld [vmem:[%s4067_s7 + $0x8] sm:$0xff]  ;;  %v365_v16 = vld [vmem:[%s4067_s7 + $0x10] sm:$0xff]  ;;  %v3482_v18 = vmov 0.0|0.0  }
  0xb9   :  { %2755 = vmatpush3.msk.msra.mxu1 %vm189_vm0, %v270_v3  ;;  %v3727_v15 = vpack.c.bf16 %v364_v14, %v363_v13  ;;  %v366_v17 = vld [vmem:[%s4067_s7 + $0x18] sm:$0xff]  ;;  %vm3483_vm3 = vmmov 0   ;;  %v3484_v20 = vmov 0.0   ;;  %v2590_v21 = vld [vmem:[%s4065_s5] ss:$0 sm:$0xff]  ;;  %s4094_s14 = sld [smem:[#allocation25_spill]] }
  0xba   :  { %2759 = vmatprep.subr.msk.mxu0 %vm189_vm0, %v369_v12  ;;  %2978 = vmatprep.subr.bf16.mxu1 %v3482_v18  ;;  %v3737_v19 = vpack.c.bf16 %v366_v17, %v365_v16  ;;  %vm453_vm4 = vcmask 15360   ;;  %v2600_v30 = vld [vmem:[#allocation9] ss:$0 sm:$0xff]  ;;  %s3485_s8 = smov 32   ;;  %s3486_s30 = smov 64   ;;  %vm649_vm5 = vcmask 254976  }
  0xbb   :  { %vm546_vm6 = vcmask 261120   ;;  %vm758_vm7 = vcmask 257026   ;;  %vm982_vm8 = vcmask 261126   ;;  %vm870_vm9 = vcmask 259076   ;;  %s3487_s2 = smov [#allocation18]  }
  0xbc   :  { %s2573_s28 = sshll.u32 %s3487_s2, 4  ;;  %vm2565_vm10 = vcmask 74752   ;;  %s2574_s28 = int_to_ptr.vmem [resolvable:$true] %s2573_s28 }
  0xbd   :  { %v172_v1 = vld [vmem:[%s4092_s25] sm:$0xff]  ;;  %v173_v2 = vld [vmem:[%s4092_s25 + $0x8] sm:$0xff]  ;;  %s3439_s13 = scalar_lea.vmem %s2574_s28, 32  ;;  %p3444_p3 = scmp.lt.s32.totalorder %s2574_s28, %s2574_s28 }
  0xbe   :  { %2751 = vmatprep.mubr.msk.f32.mxu0 %vm182_vm1, %v172_v1  ;;  %v2586_v4 = vld [vmem:[%s4093_s11] ss:$0 sm:$0xff]  ;;  %p3440_p2 = scmp.ne.s32.totalorder %s2574_s28, %s3439_s13  ;;  %p3445_p4 = scmp.lt.s32.totalorder %s3439_s13, %s3439_s13 }
  0xbf   :  { %2752 = vmatmul.mubr.msk.f32.vlgmr.msra.gmra.mrb[0].mxu0 %vm182_vm1, %v173_v2  ;;  %v170_v26 = vld [vmem:[%s4094_s14] sm:$0xff]  ;;  %v171_v27 = vld [vmem:[%s4094_s14 + $0x8] sm:$0xff] }
  0xc0   :  { %2760 = vmatpush3.msk.msra.mxu0 %vm189_vm0, %v369_v12  ;;  %p3446_p5 = por %p3445_p4, %p3444_p3 }
  0xc1   :  { %2764 = vmatprep.subr.msk.mxu0 %vm460_vm2, %v362_v11 }
  0xc2   :  { %p3447_p6 = pnand %p3446_p5, %p3440_p2 }
 0x192   :  { %v2753_v5 = vpop.f32.mrb[0].mxu0 }
 0x193   :  { %v265_v6 = vadd.f32 %v2753_v5, %v2586_v4  ;;  %v259_v7 = vpop.f32.mrb[1].mxu0 }
 0x194   :  { %v260_v8 = vadd.f32 %v2586_v4, %v259_v7 }
 0x195   :  { %v269_v10 = vmax.f32 %v265_v6, 0.0 }
 0x196   :  { %v268_v9 = vmax.f32 %v260_v8, 0.0 }
 0x198   :  { %2756 = vmatprep.mubr.msk.f32.mxu1 %vm182_vm1, %v268_v9 }
 0x199   :  { %2757 = vmatmul.mubr.msk.f32.vlgmr.msra.gmra.mrb[0].mxu1 %vm182_vm1, %v269_v10 }
 0x19a   :  { %2980 = vmatpush3.bf16.msra.mxu1 %v3727_v15  ;;  %2777 = vmatprep.mubr.msk.f32.mxu1 %vm3483_vm3, %v3484_v20 }
 0x19b   :  { %2981 = vmatprep.subr.bf16.mxu1 %v3482_v18 }
 0x19e   :  { %2983 = vmatpush3.bf16.msra.mxu1 %v3737_v19 }
 0x19f   :  { %2990 = vmatprep.subr.bf16.mxu1 %v3482_v18 }
 0x1a1   :  { %2778 = vmatmul.mubr.f32.vlgmr.msra.gmra.mrb[2].mxu1 %v3484_v20 }
 0x1a2   :  { %2992 = vmatpush3.bf16.msra.mxu1 %v3727_v15  ;;  %2799 = vmatprep.mubr.msk.f32.mxu1 %vm3483_vm3, %v3484_v20 }
 0x1a3   :  { %2993 = vmatprep.subr.bf16.mxu1 %v3482_v18 }
 0x1a6   :  { %2995 = vmatpush3.bf16.msra.mxu1 %v3737_v19 }
 0x1a7   :  { %3002 = vmatprep.subr.bf16.mxu1 %v3482_v18 }
 0x26c   :  { %v2758_v22 = vpop.f32.mrb[0].mxu1 }
 0x26d   :  { %v353_v23 = vpop.f32.mrb[1].mxu1  ;;  %v359_v25 = vadd.f32 %v2758_v22, %v2590_v21 }
 0x26e   :  { %v354_v24 = vadd.f32 %v2590_v21, %v353_v23 }
 0x270   :  { %2761 = vmatprep.mubr.msk.f32.mxu0 %vm182_vm1, %v354_v24 }
 0x271   :  { %2762 = vmatmul.mubr.msk.f32.vlgmr.msra.gmra.mrb[2].mxu0 %vm182_vm1, %v359_v25 }
 0x272   :  { %2765 = vmatpush3.msk.msra.mxu0 %vm460_vm2, %v362_v11  ;;  %2766 = vmatprep.mubr.msk.f32.mxu0 %vm453_vm4, %v170_v26 }
 0x273   :  { %2984 = vmatprep.subr.bf16.mxu0 %v3482_v18 }
 0x274   :  { %v616_v28 = vpop.f32.mrb[2].mxu1 }
 0x275   :  { %v2779_v29 = vpop.f32.mrb[3].mxu1 }
 0x279   :  { %2767 = vmatmul.mubr.msk.f32.vlgmr.msra.gmra.mrb[2].mxu0 %vm453_vm4, %v171_v27 }
 0x27a   :  { %2986 = vmatpush3.bf16.msra.mxu0 %v3727_v15  ;;  %2788 = vmatprep.mubr.msk.f32.mxu0 %vm3483_vm3, %v3484_v20 }
 0x27b   :  { %2987 = vmatprep.subr.bf16.mxu0 %v3482_v18 }
 0x27e   :  { %2989 = vmatpush3.bf16.msra.mxu0 %v3737_v19 }
 0x27f   :  { %2996 = vmatprep.subr.bf16.mxu0 %v3482_v18 }
 0x34c   :  { %v2768_v31 = vpop.f32.mrb[2].mxu0 }
 0x34d   :  { %v3770_v32 = vadd.f32 %v2768_v31, %v2600_v30  ;;  %v529_v33 = vpop.f32.mrb[3].mxu0 }
 0x34e   :  { %v3772_v34 = vadd.f32 %v2600_v30, %v529_v33 }
 0x350   :  { %v620_v35 = vadd.f32 %v616_v28, %v3772_v34 }
 0x352   :  { %3111 = vtanh.f32 %v620_v35  ;;  %v2601_v37 = vmul.f32 -1.442695, %v620_v35 }
 0x354   :  { %3113 = vpow2.f32 %v2601_v37 }
 0x35c   :  { %v3112_v36 = vpop.eup %3111 }
 0x35d   :  { %630 = vrot.lane.b32.xlu0 %v3112_v36, %s3485_s8 }
 0x35e   :  { %v3114_v38 = vpop.eup %3113 }
 0x35f   :  { %v624_v39 = vadd.f32 1.0, %v3114_v38 }
 0x361   :  { %3115 = vrcp.f32 %v624_v39 }
 0x36b   :  { %v3116_v40 = vpop.eup %3115 }
 0x36c   :  { %v628_v43 = vmul.f32 0.0, %v3116_v40 }
 0x3cf   :  { %v631_v41 = vpop.permute.xlu0 %630 }
 0x3d0   :  { %v633_v42 = vmul.f32 %v3116_v40, %v631_v41 }
 0x3d2   :  { %635 = vrot.lane.b32.xlu0 %v633_v42, %s3485_s8 }
 0x444   :  { %v636_v44 = vpop.permute.xlu0 %635 }
 0x445   :  { %v638_v45 = vadd.f32 %v636_v44, %v628_v43 }
 0x447   :  { %3117 = vtanh.f32 %v638_v45  ;;  %v735_v61 = vrot.slane %v638_v45, 6 }
 0x451   :  { %v3118_v46 = vpop.eup %3117 }
 0x452   :  { %641 = vrot.lane.b32.xlu1 %v3118_v46, %s3485_s8 }
 0x4c4   :  { %v642_v47 = vpop.permute.xlu1 %641 }
 0x4c5   :  { %v644_v48 = vmul.f32 %v3116_v40, %v642_v47 }
 0x4c7   :  { %646 = vrot.lane.b32.xlu1 %v644_v48, %s3486_s30 }
 0x539   :  { %v647_v49 = vpop.permute.xlu1 %646 }
 0x53a   :  { %650 = vst.msk [vmem:[#allocation2] sm:$0x3] %vm649_vm5, %v647_v49  ;;  %2789 = vmatmul.mubr.msk.f32.vlgmr.msra.gmra.mrb[4].mxu0 %vm546_vm6, %v647_v49 }
 0x53b   :  { %2998 = vmatpush3.bf16.msra.mxu0 %v3727_v15  ;;  %2810 = vmatprep.mubr.msk.f32.mxu0 %vm3483_vm3, %v3484_v20 }
 0x53c   :  { %2999 = vmatprep.subr.bf16.mxu0 %v3482_v18 }
 0x53f   :  { %3001 = vmatpush3.bf16.msra.mxu0 %v3737_v19 }
 0x540   :  { %3008 = vmatprep.subr.bf16.mxu0 %v3482_v18 }
 0x60d   :  { %v719_v50 = vpop.f32.mrb[4].mxu0 }
 0x60e   :  { %v724_v51 = vrot.slane %v719_v50, 6  ;;  %v2790_v52 = vpop.f32.mrb[5].mxu0 }
 0x610   :  { %v726_v53 = vadd.f32 %v724_v51, %v3772_v34 }
 0x612   :  { %3119 = vtanh.f32 %v726_v53  ;;  %v2603_v55 = vmul.f32 -1.442695, %v726_v53 }
 0x614   :  { %3121 = vpow2.f32 %v2603_v55 }
 0x61c   :  { %v3120_v54 = vpop.eup %3119 }
 0x61d   :  { %739 = vrot.lane.b32.xlu0 %v3120_v54, %s3485_s8 }
 0x61e   :  { %v3122_v56 = vpop.eup %3121 }
 0x61f   :  { %v730_v57 = vadd.f32 1.0, %v3122_v56 }
 0x621   :  { %3123 = vrcp.f32 %v730_v57 }
 0x62b   :  { %v3124_v58 = vpop.eup %3123 }
 0x62c   :  { %v737_v62 = vmul.f32 %v3124_v58, %v735_v61 }
 0x68f   :  { %v740_v59 = vpop.permute.xlu0 %739 }
 0x690   :  { %v742_v60 = vmul.f32 %v3124_v58, %v740_v59 }
 0x692   :  { %744 = vrot.lane.b32.xlu1 %v742_v60, %s3485_s8 }
 0x704   :  { %v745_v63 = vpop.permute.xlu1 %744 }
 0x705   :  { %v747_v0 = vadd.f32 %v745_v63, %v737_v62 }
 0x707   :  { %3125 = vtanh.f32 %v747_v0  ;;  %v847_v21 = vrot.slane %v747_v0, 6 }
 0x711   :  { %v3126_v1 = vpop.eup %3125 }
 0x712   :  { %750 = vrot.lane.b32.xlu0 %v3126_v1, %s3485_s8 }
 0x784   :  { %v751_v2 = vpop.permute.xlu0 %750 }
 0x785   :  { %v3791_v3 = vmul.f32 %v3124_v58, %v751_v2 }
 0x787   :  { %v760_v4 = vrot.slane %v3791_v3, 2 }
 0x789   :  { %761 = vrot.lane.b32.xlu1 %v760_v4, %s3486_s30 }
 0x7fb   :  { %v762_v5 = vpop.permute.xlu1 %761 }
 0x7fc   :  { %2800 = vmatmul.mubr.msk.f32.vlgmr.msra.gmra.mrb[4].mxu1 %vm546_vm6, %v762_v5 }
 0x7fd   :  { %3004 = vmatpush3.bf16.msra.mxu1 %v3727_v15  ;;  %2821 = vmatprep.mubr.msk.f32.mxu1 %vm3483_vm3, %v3484_v20 }
 0x7fe   :  { %3005 = vmatprep.subr.bf16.mxu1 %v3482_v18 }
 0x801   :  { %3007 = vmatpush3.bf16.msra.mxu1 %v3737_v19 }
 0x802   :  { %3014 = vmatprep.subr.bf16.mxu1 %v3482_v18 }
 0x8cf   :  { %v831_v6 = vpop.f32.mrb[4].mxu1 }
 0x8d0   :  { %v836_v7 = vrot.slane %v831_v6, 4  ;;  %v2801_v8 = vpop.f32.mrb[5].mxu1 }
 0x8d2   :  { %v838_v9 = vadd.f32 %v836_v7, %v3772_v34 }
 0x8d4   :  { %3127 = vtanh.f32 %v838_v9  ;;  %v2605_v11 = vmul.f32 -1.442695, %v838_v9 }
 0x8d6   :  { %3129 = vpow2.f32 %v2605_v11 }
 0x8de   :  { %v3128_v10 = vpop.eup %3127 }
 0x8df   :  { %851 = vrot.lane.b32.xlu0 %v3128_v10, %s3485_s8 }
 0x8e0   :  { %v3130_v12 = vpop.eup %3129 }
 0x8e1   :  { %v842_v13 = vadd.f32 1.0, %v3130_v12 }
 0x8e3   :  { %3131 = vrcp.f32 %v842_v13 }
 0x8ed   :  { %v3132_v14 = vpop.eup %3131 }
 0x8ee   :  { %v849_v22 = vmul.f32 %v3132_v14, %v847_v21 }
 0x951   :  { %v852_v16 = vpop.permute.xlu0 %851 }
 0x952   :  { %v854_v17 = vmul.f32 %v3132_v14, %v852_v16 }
 0x954   :  { %856 = vrot.lane.b32.xlu1 %v854_v17, %s3485_s8 }
 0x9c6   :  { %v857_v23 = vpop.permute.xlu1 %856 }
 0x9c7   :  { %v859_v24 = vadd.f32 %v857_v23, %v849_v22 }
 0x9c9   :  { %3133 = vtanh.f32 %v859_v24  ;;  %v959_v43 = vrot.slane %v859_v24, 6 }
 0x9d3   :  { %v3134_v25 = vpop.eup %3133 }
 0x9d4   :  { %862 = vrot.lane.b32.xlu0 %v3134_v25, %s3485_s8 }
 0xa46   :  { %v863_v26 = vpop.permute.xlu0 %862 }
 0xa47   :  { %v3806_v27 = vmul.f32 %v3132_v14, %v863_v26 }
 0xa49   :  { %v872_v28 = vrot.slane %v3806_v27, 4 }
 0xa4b   :  { %873 = vrot.lane.b32.xlu1 %v872_v28, %s3486_s30 }
 0xabd   :  { %v874_v29 = vpop.permute.xlu1 %873 }
 0xabe   :  { %2811 = vmatmul.mubr.msk.f32.vlgmr.msra.gmra.mrb[6].mxu0 %vm546_vm6, %v874_v29 }
 0xabf   :  { %3010 = vmatpush3.bf16.msra.mxu0 %v3727_v15  ;;  %2832 = vmatprep.mubr.msk.f32.mxu0 %vm3483_vm3, %v3484_v20 }
 0xac0   :  { %3011 = vmatprep.subr.bf16.mxu0 %v3482_v18 }
 0xac3   :  { %3013 = vmatpush3.bf16.msra.mxu0 %v3737_v19 }
 0xac4   :  { %3020 = vmatprep.subr.bf16.mxu0 %v3482_v18 }
 0xb91   :  { %v943_v30 = vpop.f32.mrb[6].mxu0 }
 0xb92   :  { %v948_v31 = vrot.slane %v943_v30, 2  ;;  %v2812_v33 = vpop.f32.mrb[7].mxu0 }
 0xb94   :  { %v950_v35 = vadd.f32 %v948_v31, %v3772_v34 }
 0xb96   :  { %3135 = vtanh.f32 %v950_v35  ;;  %v2607_v37 = vmul.f32 -1.442695, %v950_v35 }
 0xb98   :  { %3137 = vpow2.f32 %v2607_v37 }
 0xba0   :  { %v3136_v36 = vpop.eup %3135 }
 0xba1   :  { %963 = vrot.lane.b32.xlu0 %v3136_v36, %s3485_s8 }
 0xba2   :  { %v3138_v38 = vpop.eup %3137 }
 0xba3   :  { %v954_v39 = vadd.f32 1.0, %v3138_v38 }
 0xba5   :  { %3139 = vrcp.f32 %v954_v39 }
 0xbaf   :  { %v3140_v40 = vpop.eup %3139 }
 0xbb0   :  { %v961_v44 = vmul.f32 %v3140_v40, %v959_v43 }
 0xc13   :  { %v964_v41 = vpop.permute.xlu0 %963 }
 0xc14   :  { %v966_v42 = vmul.f32 %v3140_v40, %v964_v41 }
 0xc16   :  { %968 = vrot.lane.b32.xlu1 %v966_v42, %s3485_s8 }
 0xc88   :  { %v969_v45 = vpop.permute.xlu1 %968 }
 0xc89   :  { %v971_v46 = vadd.f32 %v969_v45, %v961_v44 }
 0xc8b   :  { %3141 = vtanh.f32 %v971_v46  ;;  %v1068_v61 = vrot.slane %v971_v46, 6 }
 0xc95   :  { %v3142_v34 = vpop.eup %3141 }
 0xc96   :  { %974 = vrot.lane.b32.xlu0 %v3142_v34, %s3485_s8 }
 0xd08   :  { %v975_v47 = vpop.permute.xlu0 %974 }
 0xd09   :  { %v3821_v48 = vmul.f32 %v3140_v40, %v975_v47 }
 0xd0b   :  { %v984_v49 = vrot.slane %v3821_v48, 6 }
 0xd0d   :  { %985 = vrot.lane.b32.xlu1 %v984_v49, %s3486_s30 }
 0xd7f   :  { %v986_v50 = vpop.permute.xlu1 %985 }
 0xd80   :  { %2822 = vmatmul.mubr.msk.f32.vlgmr.msra.gmra.mrb[6].mxu1 %vm546_vm6, %v986_v50 }
 0xd81   :  { %3016 = vmatpush3.bf16.msra.mxu1 %v3727_v15  ;;  %2843 = vmatprep.mubr.msk.f32.mxu1 %vm3483_vm3, %v3484_v20 }
 0xd82   :  { %3017 = vmatprep.subr.bf16.mxu1 %v3482_v18 }
 0xd85   :  { %3019 = vmatpush3.bf16.msra.mxu1 %v3737_v19 }
 0xe53   :  { %v1055_v51 = vpop.f32.mrb[6].mxu1 }
 0xe54   :  { %v1059_v52 = vadd.f32 %v1055_v51, %v3770_v32  ;;  %v2823_v53 = vpop.f32.mrb[7].mxu1 }
 0xe56   :  { %3143 = vtanh.f32 %v1059_v52  ;;  %v2609_v55 = vmul.f32 -1.442695, %v1059_v52 }
 0xe58   :  { %3145 = vpow2.f32 %v2609_v55 }
 0xe60   :  { %v3144_v54 = vpop.eup %3143 }
 0xe61   :  { %1072 = vrot.lane.b32.xlu0 %v3144_v54, %s3485_s8 }
 0xe62   :  { %v3146_v56 = vpop.eup %3145 }
 0xe63   :  { %v1063_v57 = vadd.f32 1.0, %v3146_v56 }
 0xe65   :  { %3147 = vrcp.f32 %v1063_v57 }
 0xe6f   :  { %v3148_v58 = vpop.eup %3147 }
 0xe70   :  { %v1070_v62 = vmul.f32 %v3148_v58, %v1068_v61 }
 0xed3   :  { %v1073_v59 = vpop.permute.xlu0 %1072 }
 0xed4   :  { %v1075_v60 = vmul.f32 %v3148_v58, %v1073_v59 }
 0xed6   :  { %1077 = vrot.lane.b32.xlu1 %v1075_v60, %s3485_s8 }
 0xf48   :  { %v1078_v63 = vpop.permute.xlu1 %1077 }
 0xf49   :  { %v1080_v0 = vadd.f32 %v1078_v63, %v1070_v62 }
 0xf4b   :  { %3149 = vtanh.f32 %v1080_v0 }
 0xf55   :  { %v3150_v1 = vpop.eup %3149 }
 0xf56   :  { %1083 = vrot.lane.b32.xlu0 %v3150_v1, %s3485_s8 }
 0xfc8   :  { %v1084_v2 = vpop.permute.xlu0 %1083 }
 0xfc9   :  { %v1086_v4 = vmul.f32 %v3148_v58, %v1084_v2 }
 0xfcb   :  { %1088 = vrot.lane.b32.xlu1 %v1086_v4, %s3486_s30 }
0x103d   :  { %v1089_v5 = vpop.permute.xlu1 %1088 }
0x103e   :  { %1091 = vst.msk [vmem:[#allocation2 + $0x8] sm:$0x3] %vm649_vm5, %v1089_v5  ;;  %2833 = vmatmul.mubr.msk.f32.vlgmr.msra.gmra.mrb[8].mxu0 %vm546_vm6, %v1089_v5  ;;  %v1423_v5 = vld [vmem:[%s4069_s9 + $0x8] sm:$0xff] }
0x103f   :  { %3022 = vmatpush3.bf16.msra.mxu0 %v3727_v15  ;;  %2854 = vmatprep.mubr.msk.f32.mxu0 %vm3483_vm3, %v3484_v20 }
0x1040   :  { %3023 = vmatprep.subr.bf16.mxu0 %v3482_v18 }
0x1043   :  { %3025 = vmatpush3.bf16.msra.mxu0 %v3737_v19  ;;  %v1176_v19 = vrot.slane %v1080_v0, 6 }
0x1044   :  { %3034 = vmatprep.subr.bf16.mxu0 %v3482_v18 }
0x1111   :  { %v1160_v6 = vpop.f32.mrb[8].mxu0 }
0x1112   :  { %v1165_v7 = vrot.slane %v1160_v6, 6  ;;  %v2834_v8 = vpop.f32.mrb[9].mxu0 }
0x1113   :  { %v1424_v8 = vld [vmem:[%s4069_s9 + $0x10] sm:$0xff] }
0x1114   :  { %v1167_v9 = vadd.f32 %v1165_v7, %v3770_v32  ;;  %v1426_v7 = vld [vmem:[%s4070_s10] sm:$0xff] }
0x1116   :  { %3151 = vtanh.f32 %v1167_v9  ;;  %v2611_v11 = vmul.f32 -1.442695, %v1167_v9 }
0x1118   :  { %3153 = vpow2.f32 %v2611_v11  ;;  %v1428_v11 = vld [vmem:[%s4070_s10 + $0x10] sm:$0xff] }
0x1120   :  { %v3152_v10 = vpop.eup %3151 }
0x1121   :  { %1180 = vrot.lane.b32.xlu0 %v3152_v10, %s3485_s8  ;;  %v1425_v10 = vld [vmem:[%s4069_s9 + $0x18] sm:$0xff] }
0x1122   :  { %v3154_v15 = vpop.eup %3153 }
0x1123   :  { %v1171_v12 = vadd.f32 1.0, %v3154_v15  ;;  %v1429_v15 = vld [vmem:[%s4070_s10 + $0x18] sm:$0xff] }
0x1125   :  { %3155 = vrcp.f32 %v1171_v12  ;;  %v3030_v12 = vpack.c.bf16 %v1425_v10, %v1424_v8 }
0x112f   :  { %v3156_v13 = vpop.eup %3155 }
0x1130   :  { %v1178_v17 = vmul.f32 %v3156_v13, %v1176_v19 }
0x1193   :  { %v1181_v14 = vpop.permute.xlu0 %1180 }
0x1194   :  { %v1183_v16 = vmul.f32 %v3156_v13, %v1181_v14 }
0x1196   :  { %1185 = vrot.lane.b32.xlu1 %v1183_v16, %s3485_s8 }
0x1208   :  { %v1186_v21 = vpop.permute.xlu1 %1185 }
0x1209   :  { %v1188_v22 = vadd.f32 %v1186_v21, %v1178_v17 }
0x120b   :  { %3157 = vtanh.f32 %v1188_v22  ;;  %v1287_v42 = vrot.slane %v1188_v22, 6 }
0x1215   :  { %v3158_v23 = vpop.eup %3157 }
0x1216   :  { %1191 = vrot.lane.b32.xlu0 %v3158_v23, %s3485_s8 }
0x1288   :  { %v1192_v24 = vpop.permute.xlu0 %1191 }
0x1289   :  { %v3848_v25 = vmul.f32 %v3156_v13, %v1192_v24  ;;  %v3904_v13 = vpack.c.bf16 %v1429_v15, %v1428_v11 }
0x128b   :  { %v1200_v26 = vrot.slane %v3848_v25, 2 }
0x128d   :  { %1201 = vrot.lane.b32.xlu1 %v1200_v26, %s3486_s30  ;;  %v2616_v26 = vld [vmem:[#allocation11] ss:$0 sm:$0xff] }
0x12ff   :  { %v1202_v28 = vpop.permute.xlu1 %1201 }
0x1300   :  { %2844 = vmatmul.mubr.msk.f32.vlgmr.msra.gmra.mrb[8].mxu1 %vm546_vm6, %v1202_v28 }
0x13d3   :  { %v1271_v29 = vpop.f32.mrb[8].mxu1 }
0x13d4   :  { %v1276_v30 = vrot.slane %v1271_v29, 4  ;;  %v2845_v31 = vpop.f32.mrb[9].mxu1 }
0x13d6   :  { %v1278_v33 = vadd.f32 %v1276_v30, %v3770_v32 }
0x13d8   :  { %3159 = vtanh.f32 %v1278_v33  ;;  %v2613_v36 = vmul.f32 -1.442695, %v1278_v33 }
0x13da   :  { %3161 = vpow2.f32 %v2613_v36 }
0x13e2   :  { %v3160_v35 = vpop.eup %3159 }
0x13e3   :  { %1291 = vrot.lane.b32.xlu0 %v3160_v35, %s3485_s8 }
0x13e4   :  { %v3162_v37 = vpop.eup %3161 }
0x13e5   :  { %v1282_v38 = vadd.f32 1.0, %v3162_v37 }
0x13e7   :  { %3163 = vrcp.f32 %v1282_v38 }
0x13f1   :  { %v3164_v39 = vpop.eup %3163 }
0x13f2   :  { %v1289_v43 = vmul.f32 %v3164_v39, %v1287_v42 }
0x1455   :  { %v1292_v40 = vpop.permute.xlu0 %1291 }
0x1456   :  { %v1294_v41 = vmul.f32 %v3164_v39, %v1292_v40 }
0x1458   :  { %1296 = vrot.lane.b32.xlu1 %v1294_v41, %s3485_s8 }
0x14ca   :  { %v1297_v44 = vpop.permute.xlu1 %1296 }
0x14cb   :  { %v1299_v45 = vadd.f32 %v1297_v44, %v1289_v43 }
0x14cd   :  { %3165 = vtanh.f32 %v1299_v45 }
0x14d7   :  { %v3166_v46 = vpop.eup %3165 }
0x14d8   :  { %1302 = vrot.lane.b32.xlu0 %v3166_v46, %s3485_s8 }
0x154a   :  { %v1303_v34 = vpop.permute.xlu0 %1302 }
0x154b   :  { %v1305_v47 = vmul.f32 %v3164_v39, %v1303_v34 }
0x154d   :  { %v1311_v49 = vrot.slane %v1305_v47, 4 }
0x154f   :  { %1312 = vrot.lane.b32.xlu1 %v1311_v49, %s3486_s30 }
0x15c1   :  { %v1313_v50 = vpop.permute.xlu1 %1312 }
0x15c2   :  { %2855 = vmatmul.mubr.msk.f32.vlgmr.msra.gmra.mrb[10].mxu0 %vm546_vm6, %v1313_v50 }
0x15c3   :  { %2876 = vmatprep.mubr.msk.f32.mxu0 %vm3483_vm3, %v3484_v20 }
0x1695   :  { %v1382_v51 = vpop.f32.mrb[10].mxu0 }
0x1696   :  { %v1387_v52 = vrot.slane %v1382_v51, 2  ;;  %v2856_v53 = vpop.f32.mrb[11].mxu0 }
0x1698   :  { %v1389_v54 = vadd.f32 %v1387_v52, %v3770_v32  ;;  %v1398_v32 = vrot.slane %v1299_v45, 6 }
0x169a   :  { %3167 = vtanh.f32 %v1389_v54  ;;  %v2615_v56 = vmul.f32 -1.442695, %v1389_v54 }
0x169c   :  { %3169 = vpow2.f32 %v2615_v56 }
0x16a4   :  { %v3168_v55 = vpop.eup %3167 }
0x16a5   :  { %1402 = vrot.lane.b32.xlu0 %v3168_v55, %s3485_s8 }
0x16a6   :  { %v3170_v57 = vpop.eup %3169 }
0x16a7   :  { %v1393_v58 = vadd.f32 1.0, %v3170_v57 }
0x16a9   :  { %3171 = vrcp.f32 %v1393_v58 }
0x16b3   :  { %v3172_v59 = vpop.eup %3171 }
0x16b4   :  { %v1400_v62 = vmul.f32 %v3172_v59, %v1398_v32 }
0x1717   :  { %v1403_v60 = vpop.permute.xlu0 %1402 }
0x1718   :  { %v1405_v61 = vmul.f32 %v3172_v59, %v1403_v60 }
0x171a   :  { %1407 = vrot.lane.b32.xlu1 %v1405_v61, %s3485_s8 }
0x171e   :  { %755 = vrot.lane.b32.xlu1 %v3791_v3, %s3486_s30 }
0x1722   :  { %979 = vrot.lane.b32.xlu1 %v3821_v48, %s3486_s30  ;;  %v1422_v48 = vld [vmem:[%s4069_s9] sm:$0xff] }
0x1723   :  { %v3026_v6 = vpack.c.bf16 %v1423_v5, %v1422_v48 }
0x1725   :  { %3027 = vmatprep.subr.bf16.mxu1 %v3026_v6 }
0x1726   :  { %1307 = vrot.lane.b32.xlu1 %v1305_v47, %s3486_s30  ;;  %3029 = vmatpush3.bf16.msra.mxu1 %v3026_v6 }
0x1727   :  { %3031 = vmatprep.subr.bf16.mxu1 %v3030_v12 }
0x172a   :  { %3033 = vmatpush3.bf16.msra.mxu1 %v3030_v12 }
0x172b   :  { %3040 = vmatprep.subr.bf16.mxu1 %v3482_v18 }
0x178c   :  { %v1408_v63 = vpop.permute.xlu1 %1407 }
0x178d   :  { %v1410_v0 = vadd.f32 %v1408_v63, %v1400_v62 }
0x178f   :  { %3173 = vtanh.f32 %v1410_v0 }
0x1790   :  { %v756_v1 = vpop.permute.xlu1 %755 }
0x1791   :  { %759 = vst.msk [vmem:[#allocation2] sm:$0xc] %vm758_vm7, %v756_v1 }
0x1794   :  { %v980_v2 = vpop.permute.xlu1 %979 }
0x1795   :  { %983 = vst.msk [vmem:[#allocation2] sm:$0xc0] %vm982_vm8, %v980_v2 }
0x1798   :  { %v1308_v3 = vpop.permute.xlu1 %1307 }
0x1799   :  { %v3174_v4 = vpop.eup %3173  ;;  %1310 = vst.msk [vmem:[#allocation2 + $0x8] sm:$0x30] %vm870_vm9, %v1308_v3 }
0x179a   :  { %1413 = vrot.lane.b32.xlu0 %v3174_v4, %s3485_s8 }
0x179e   :  { %867 = vrot.lane.b32.xlu0 %v3806_v27, %s3486_s30  ;;  %v1427_v27 = vld [vmem:[%s4070_s10 + $0x8] sm:$0xff] }
0x179f   :  { %v3892_v9 = vpack.c.bf16 %v1427_v27, %v1426_v7 }
0x17a1   :  { %3036 = vmatpush3.bf16.msra.mxu0 %v3892_v9 }
0x17a2   :  { %1196 = vrot.lane.b32.xlu0 %v3848_v25, %s3486_s30  ;;  %3037 = vmatprep.subr.bf16.mxu0 %v3482_v18 }
0x17a5   :  { %3039 = vmatpush3.bf16.msra.mxu0 %v3904_v13 }
0x17a6   :  { %3046 = vmatprep.subr.bf16.mxu0 %v3482_v18 }
0x17a8   :  { %2877 = vmatmul.mubr.f32.vlgmr.msra.gmra.mrb[12].mxu0 %v3484_v20 }
0x17a9   :  { %3048 = vmatpush3.bf16.msra.mxu0 %v3892_v9  ;;  %2898 = vmatprep.mubr.msk.f32.mxu0 %vm3483_vm3, %v3484_v20 }
0x17aa   :  { %3049 = vmatprep.subr.bf16.mxu0 %v3482_v18 }
0x17ad   :  { %3051 = vmatpush3.bf16.msra.mxu0 %v3904_v13 }
0x17ae   :  { %3058 = vmatprep.subr.bf16.mxu0 %v3482_v18 }
0x180c   :  { %v1414_v14 = vpop.permute.xlu0 %1413 }
0x180d   :  { %v1416_v16 = vmul.f32 %v3172_v59, %v1414_v14 }
0x180f   :  { %1418 = vrot.lane.b32.xlu0 %v1416_v16, %s3486_s30 }
0x1810   :  { %v868_v19 = vpop.permute.xlu0 %867 }
0x1811   :  { %871 = vst.msk [vmem:[#allocation2] sm:$0x30] %vm870_vm9, %v868_v19 }
0x1814   :  { %v1197_v17 = vpop.permute.xlu0 %1196 }
0x1815   :  { %1199 = vst.msk [vmem:[#allocation2 + $0x8] sm:$0xc] %vm758_vm7, %v1197_v17 }
0x1818   :  { %v1431_v21 = vld [vmem:[#allocation2] sm:$0xff] }
0x1819   :  { %2865 = vmatprep.mubr.msk.f32.mxu1 %vm546_vm6, %v1431_v21 }
0x187b   :  { %v1586_v24 = vpop.f32.mrb[12].mxu0 }
0x187c   :  { %v2878_v25 = vpop.f32.mrb[13].mxu0 }
0x1881   :  { %v1419_v22 = vpop.permute.xlu0 %1418 }
0x1882   :  { %1421 = vst.msk [vmem:[#allocation2 + $0x8] sm:$0xc0] %vm982_vm8, %v1419_v22 }
0x1889   :  { %v1432_v23 = vld [vmem:[#allocation2 + $0x8] sm:$0xff] }
0x188a   :  { %2866 = vmatmul.mubr.msk.f32.vlgmr.msra.gmra.mrb[10].mxu1 %vm546_vm6, %v1432_v23 }
0x188b   :  { %3042 = vmatpush3.bf16.msra.mxu1 %v3892_v9  ;;  %2887 = vmatprep.mubr.msk.f32.mxu1 %vm3483_vm3, %v3484_v20 }
0x188c   :  { %3043 = vmatprep.subr.bf16.mxu1 %v3482_v18 }
0x188f   :  { %3045 = vmatpush3.bf16.msra.mxu1 %v3904_v13 }
0x1890   :  { %3052 = vmatprep.subr.bf16.mxu1 %v3482_v18 }
0x195d   :  { %v2867_v28 = vpop.f32.mrb[10].mxu1 }
0x195e   :  { %v3929_v29 = vadd.f32 %v2867_v28, %v2616_v26  ;;  %v1511_v30 = vpop.f32.mrb[11].mxu1 }
0x195f   :  { %v3931_v31 = vadd.f32 %v2616_v26, %v1511_v30 }
0x1961   :  { %v1590_v33 = vadd.f32 %v1586_v24, %v3931_v31 }
0x1963   :  { %3175 = vtanh.f32 %v1590_v33  ;;  %v2619_v36 = vmul.f32 -1.442695, %v1590_v33 }
0x1965   :  { %3177 = vpow2.f32 %v2619_v36 }
0x196d   :  { %v3176_v35 = vpop.eup %3175 }
0x196e   :  { %1600 = vrot.lane.b32.xlu1 %v3176_v35, %s3485_s8 }
0x196f   :  { %v3178_v37 = vpop.eup %3177 }
0x1970   :  { %v1594_v38 = vadd.f32 1.0, %v3178_v37 }
0x1972   :  { %3179 = vrcp.f32 %v1594_v38 }
0x197c   :  { %v3180_v39 = vpop.eup %3179 }
0x197d   :  { %v1598_v42 = vmul.f32 0.0, %v3180_v39 }
0x19e0   :  { %v1601_v40 = vpop.permute.xlu1 %1600 }
0x19e1   :  { %v1603_v41 = vmul.f32 %v3180_v39, %v1601_v40 }
0x19e3   :  { %1605 = vrot.lane.b32.xlu0 %v1603_v41, %s3485_s8 }
0x1a55   :  { %v1606_v43 = vpop.permute.xlu0 %1605 }
0x1a56   :  { %v1608_v44 = vadd.f32 %v1606_v43, %v1598_v42 }
0x1a58   :  { %3181 = vtanh.f32 %v1608_v44  ;;  %v1702_v60 = vrot.slane %v1608_v44, 6 }
0x1a62   :  { %v3182_v45 = vpop.eup %3181 }
0x1a63   :  { %1611 = vrot.lane.b32.xlu1 %v3182_v45, %s3485_s8 }
0x1ad5   :  { %v1612_v46 = vpop.permute.xlu1 %1611 }
0x1ad6   :  { %v1614_v34 = vmul.f32 %v3180_v39, %v1612_v46 }
0x1ad8   :  { %1616 = vrot.lane.b32.xlu0 %v1614_v34, %s3486_s30 }
0x1b4a   :  { %v1617_v47 = vpop.permute.xlu0 %1616 }
0x1b4b   :  { %2888 = vmatmul.mubr.msk.f32.vlgmr.msra.gmra.mrb[12].mxu1 %vm546_vm6, %v1617_v47 }
0x1b4c   :  { %3054 = vmatpush3.bf16.msra.mxu1 %v3892_v9  ;;  %2909 = vmatprep.mubr.msk.f32.mxu1 %vm3483_vm3, %v3484_v20 }
0x1b4d   :  { %3055 = vmatprep.subr.bf16.mxu1 %v3482_v18 }
0x1b50   :  { %3057 = vmatpush3.bf16.msra.mxu1 %v3904_v13 }
0x1b51   :  { %3064 = vmatprep.subr.bf16.mxu1 %v3482_v18 }
0x1c1e   :  { %v1686_v49 = vpop.f32.mrb[12].mxu1 }
0x1c1f   :  { %v1691_v50 = vrot.slane %v1686_v49, 6  ;;  %v2889_v51 = vpop.f32.mrb[13].mxu1 }
0x1c21   :  { %v1693_v52 = vadd.f32 %v1691_v50, %v3931_v31 }
0x1c23   :  { %3183 = vtanh.f32 %v1693_v52  ;;  %v2621_v54 = vmul.f32 -1.442695, %v1693_v52 }
0x1c25   :  { %3185 = vpow2.f32 %v2621_v54 }
0x1c2d   :  { %v3184_v53 = vpop.eup %3183 }
0x1c2e   :  { %1706 = vrot.lane.b32.xlu1 %v3184_v53, %s3485_s8 }
0x1c2f   :  { %v3186_v55 = vpop.eup %3185 }
0x1c30   :  { %v1697_v56 = vadd.f32 1.0, %v3186_v55 }
0x1c32   :  { %3187 = vrcp.f32 %v1697_v56 }
0x1c3c   :  { %v3188_v57 = vpop.eup %3187 }
0x1c3d   :  { %v1704_v61 = vmul.f32 %v3188_v57, %v1702_v60 }
0x1ca0   :  { %v1707_v58 = vpop.permute.xlu1 %1706 }
0x1ca1   :  { %v1709_v59 = vmul.f32 %v3188_v57, %v1707_v58 }
0x1ca3   :  { %1711 = vrot.lane.b32.xlu0 %v1709_v59, %s3485_s8 }
0x1d15   :  { %v1712_v32 = vpop.permute.xlu0 %1711 }
0x1d16   :  { %v1714_v62 = vadd.f32 %v1712_v32, %v1704_v61 }
0x1d18   :  { %3189 = vtanh.f32 %v1714_v62  ;;  %v1809_v14 = vrot.slane %v1714_v62, 6 }
0x1d22   :  { %v3190_v63 = vpop.eup %3189 }
0x1d23   :  { %1717 = vrot.lane.b32.xlu1 %v3190_v63, %s3485_s8 }
0x1d95   :  { %v1718_v0 = vpop.permute.xlu1 %1717 }
0x1d96   :  { %v1720_v1 = vmul.f32 %v3188_v57, %v1718_v0 }
0x1d98   :  { %v1722_v2 = vrot.slane %v1720_v1, 2 }
0x1d9a   :  { %1723 = vrot.lane.b32.xlu0 %v1722_v2, %s3486_s30 }
0x1e0c   :  { %v1724_v3 = vpop.permute.xlu0 %1723 }
0x1e0d   :  { %2899 = vmatmul.mubr.msk.f32.vlgmr.msra.gmra.mrb[14].mxu0 %vm546_vm6, %v1724_v3 }
0x1e0e   :  { %3060 = vmatpush3.bf16.msra.mxu0 %v3892_v9  ;;  %2920 = vmatprep.mubr.msk.f32.mxu0 %vm3483_vm3, %v3484_v20 }
0x1e0f   :  { %3061 = vmatprep.subr.bf16.mxu0 %v3482_v18 }
0x1e12   :  { %3063 = vmatpush3.bf16.msra.mxu0 %v3904_v13 }
0x1e13   :  { %3070 = vmatprep.subr.bf16.mxu0 %v3482_v18 }
0x1ee0   :  { %v1793_v4 = vpop.f32.mrb[14].mxu0 }
0x1ee1   :  { %v1798_v48 = vrot.slane %v1793_v4, 4  ;;  %v2900_v5 = vpop.f32.mrb[15].mxu0 }
0x1ee3   :  { %v1800_v6 = vadd.f32 %v1798_v48, %v3931_v31 }
0x1ee5   :  { %3191 = vtanh.f32 %v1800_v6  ;;  %v2623_v27 = vmul.f32 -1.442695, %v1800_v6 }
0x1ee7   :  { %3193 = vpow2.f32 %v2623_v27 }
0x1eef   :  { %v3192_v7 = vpop.eup %3191 }
0x1ef0   :  { %1813 = vrot.lane.b32.xlu1 %v3192_v7, %s3485_s8 }
0x1ef1   :  { %v3194_v8 = vpop.eup %3193 }
0x1ef2   :  { %v1804_v10 = vadd.f32 1.0, %v3194_v8 }
0x1ef4   :  { %3195 = vrcp.f32 %v1804_v10 }
0x1efe   :  { %v3196_v11 = vpop.eup %3195 }
0x1eff   :  { %v1811_v16 = vmul.f32 %v3196_v11, %v1809_v14 }
0x1f62   :  { %v1814_v15 = vpop.permute.xlu1 %1813 }
0x1f63   :  { %v1816_v12 = vmul.f32 %v3196_v11, %v1814_v15 }
0x1f65   :  { %1818 = vrot.lane.b32.xlu0 %v1816_v12, %s3485_s8 }
0x1fd7   :  { %v1819_v19 = vpop.permute.xlu0 %1818 }
0x1fd8   :  { %v1821_v17 = vadd.f32 %v1819_v19, %v1811_v16 }
0x1fda   :  { %3197 = vtanh.f32 %v1821_v17  ;;  %v1916_v42 = vrot.slane %v1821_v17, 6 }
0x1fe4   :  { %v3198_v21 = vpop.eup %3197 }
0x1fe5   :  { %1824 = vrot.lane.b32.xlu1 %v3198_v21, %s3485_s8 }
0x2057   :  { %v1825_v22 = vpop.permute.xlu1 %1824 }
0x2058   :  { %v1827_v23 = vmul.f32 %v3196_v11, %v1825_v22 }
0x205a   :  { %v1829_v24 = vrot.slane %v1827_v23, 4 }
0x205c   :  { %1830 = vrot.lane.b32.xlu0 %v1829_v24, %s3486_s30 }
0x20ce   :  { %v1831_v25 = vpop.permute.xlu0 %1830 }
0x20cf   :  { %2910 = vmatmul.mubr.msk.f32.vlgmr.msra.gmra.mrb[14].mxu1 %vm546_vm6, %v1831_v25 }
0x20d0   :  { %3066 = vmatpush3.bf16.msra.mxu1 %v3892_v9  ;;  %2931 = vmatprep.mubr.msk.f32.mxu1 %vm3483_vm3, %v3484_v20 }
0x20d1   :  { %3067 = vmatprep.subr.bf16.mxu1 %v3482_v18 }
0x20d4   :  { %3069 = vmatpush3.bf16.msra.mxu1 %v3904_v13 }
0x20d5   :  { %3076 = vmatprep.subr.bf16.mxu1 %v3482_v18 }
0x21a2   :  { %v1900_v26 = vpop.f32.mrb[14].mxu1 }
0x21a3   :  { %v1905_v28 = vrot.slane %v1900_v26, 2  ;;  %v2911_v30 = vpop.f32.mrb[15].mxu1 }
0x21a5   :  { %v1907_v33 = vadd.f32 %v1905_v28, %v3931_v31 }
0x21a7   :  { %3199 = vtanh.f32 %v1907_v33  ;;  %v2625_v36 = vmul.f32 -1.442695, %v1907_v33 }
0x21a9   :  { %3201 = vpow2.f32 %v2625_v36 }
0x21b1   :  { %v3200_v35 = vpop.eup %3199 }
0x21b2   :  { %1920 = vrot.lane.b32.xlu1 %v3200_v35, %s3485_s8 }
0x21b3   :  { %v3202_v37 = vpop.eup %3201 }
0x21b4   :  { %v1911_v38 = vadd.f32 1.0, %v3202_v37 }
0x21b6   :  { %3203 = vrcp.f32 %v1911_v38 }
0x21c0   :  { %v3204_v39 = vpop.eup %3203 }
0x21c1   :  { %v1918_v43 = vmul.f32 %v3204_v39, %v1916_v42 }
0x2224   :  { %v1921_v40 = vpop.permute.xlu1 %1920 }
0x2225   :  { %v1923_v41 = vmul.f32 %v3204_v39, %v1921_v40 }
0x2227   :  { %1925 = vrot.lane.b32.xlu0 %v1923_v41, %s3485_s8 }
0x2299   :  { %v1926_v44 = vpop.permute.xlu0 %1925 }
0x229a   :  { %v1928_v45 = vadd.f32 %v1926_v44, %v1918_v43 }
0x229c   :  { %3205 = vtanh.f32 %v1928_v45  ;;  %v2020_v60 = vrot.slane %v1928_v45, 6 }
0x22a6   :  { %v3206_v31 = vpop.eup %3205 }
0x22a7   :  { %1931 = vrot.lane.b32.xlu1 %v3206_v31, %s3485_s8 }
0x2319   :  { %v1932_v46 = vpop.permute.xlu1 %1931 }
0x231a   :  { %v1934_v34 = vmul.f32 %v3204_v39, %v1932_v46 }
0x231c   :  { %v1936_v47 = vrot.slane %v1934_v34, 6 }
0x231e   :  { %1937 = vrot.lane.b32.xlu0 %v1936_v47, %s3486_s30 }
0x2390   :  { %v1938_v49 = vpop.permute.xlu0 %1937 }
0x2391   :  { %2921 = vmatmul.mubr.msk.f32.vlgmr.msra.gmra.mrb[16].mxu0 %vm546_vm6, %v1938_v49 }
0x2392   :  { %3072 = vmatpush3.bf16.msra.mxu0 %v3892_v9  ;;  %2942 = vmatprep.mubr.msk.f32.mxu0 %vm3483_vm3, %v3484_v20 }
0x2393   :  { %3073 = vmatprep.subr.bf16.mxu0 %v3482_v18 }
0x2396   :  { %3075 = vmatpush3.bf16.msra.mxu0 %v3904_v13 }
0x2397   :  { %3082 = vmatprep.subr.bf16.mxu0 %v3482_v18 }
0x2464   :  { %v2007_v50 = vpop.f32.mrb[16].mxu0 }
0x2465   :  { %v2011_v51 = vadd.f32 %v2007_v50, %v3929_v29  ;;  %v2922_v52 = vpop.f32.mrb[17].mxu0 }
0x2467   :  { %3207 = vtanh.f32 %v2011_v51  ;;  %v2627_v54 = vmul.f32 -1.442695, %v2011_v51 }
0x2469   :  { %3209 = vpow2.f32 %v2627_v54 }
0x2471   :  { %v3208_v53 = vpop.eup %3207 }
0x2472   :  { %2024 = vrot.lane.b32.xlu1 %v3208_v53, %s3485_s8 }
0x2473   :  { %v3210_v55 = vpop.eup %3209 }
0x2474   :  { %v2015_v56 = vadd.f32 1.0, %v3210_v55 }
0x2476   :  { %3211 = vrcp.f32 %v2015_v56 }
0x2480   :  { %v3212_v57 = vpop.eup %3211 }
0x2481   :  { %v2022_v61 = vmul.f32 %v3212_v57, %v2020_v60 }
0x24e4   :  { %v2025_v58 = vpop.permute.xlu1 %2024 }
0x24e5   :  { %v2027_v59 = vmul.f32 %v3212_v57, %v2025_v58 }
0x24e7   :  { %2029 = vrot.lane.b32.xlu0 %v2027_v59, %s3485_s8 }
0x2559   :  { %v2030_v32 = vpop.permute.xlu0 %2029 }
0x255a   :  { %v2032_v62 = vadd.f32 %v2030_v32, %v2022_v61  ;;  %v2360_v61 = vld [vmem:[%s4072_s12 + $0x8] sm:$0xff]  ;;  %v2361_v32 = vld [vmem:[%s4072_s12 + $0x10] sm:$0xff] }
0x255c   :  { %3213 = vtanh.f32 %v2032_v62 }
0x2566   :  { %v3214_v63 = vpop.eup %3213 }
0x2567   :  { %2035 = vrot.lane.b32.xlu1 %v3214_v63, %s3485_s8  ;;  %v2362_v63 = vld [vmem:[%s4072_s12 + $0x18] sm:$0xff] }
0x25d9   :  { %v2036_v0 = vpop.permute.xlu1 %2035 }
0x25da   :  { %v2038_v1 = vmul.f32 %v3212_v57, %v2036_v0  ;;  %v3086_v0 = vpack.c.bf16 %v2362_v63, %v2361_v32 }
0x25dc   :  { %2040 = vrot.lane.b32.xlu0 %v2038_v1, %s3486_s30 }
0x264e   :  { %v2041_v2 = vpop.permute.xlu0 %2040 }
0x264f   :  { %2932 = vmatmul.mubr.msk.f32.vlgmr.msra.gmra.mrb[16].mxu1 %vm546_vm6, %v2041_v2 }
0x2650   :  { %3078 = vmatpush3.bf16.msra.mxu1 %v3892_v9  ;;  %2953 = vmatprep.mubr.msk.f32.mxu1 %vm3483_vm3, %v3484_v20 }
0x2651   :  { %3079 = vmatprep.subr.bf16.mxu1 %v3482_v18 }
0x2654   :  { %3081 = vmatpush3.bf16.msra.mxu1 %v3904_v13  ;;  %v2126_v13 = vrot.slane %v2032_v62, 6 }
0x2655   :  { %3088 = vmatprep.subr.bf16.mxu1 %v3482_v18 }
0x2722   :  { %v2110_v3 = vpop.f32.mrb[16].mxu1 }
0x2723   :  { %v2115_v4 = vrot.slane %v2110_v3, 6  ;;  %v2933_v48 = vpop.f32.mrb[17].mxu1 }
0x2725   :  { %v2117_v5 = vadd.f32 %v2115_v4, %v3929_v29 }
0x2727   :  { %3215 = vtanh.f32 %v2117_v5  ;;  %v2629_v7 = vmul.f32 -1.442695, %v2117_v5  ;;  %v2481_v5 = vld [vmem:[%s4078_s18] sm:$0xff] }
0x2729   :  { %3217 = vpow2.f32 %v2629_v7 }
0x2731   :  { %v3216_v6 = vpop.eup %3215 }
0x2732   :  { %2130 = vrot.lane.b32.xlu1 %v3216_v6, %s3485_s8  ;;  %v2482_v6 = vld [vmem:[%s4078_s18 + $0x8] sm:$0xff] }
0x2733   :  { %v3218_v9 = vpop.eup %3217  ;;  %v3089_v7 = vpack.c.bf16 %v2482_v6, %v2481_v5 }
0x2734   :  { %v2121_v27 = vadd.f32 1.0, %v3218_v9  ;;  %v2483_v9 = vld [vmem:[%s4078_s18 + $0x10] sm:$0xff] }
0x2736   :  { %3219 = vrcp.f32 %v2121_v27  ;;  %v2484_v27 = vld [vmem:[%s4078_s18 + $0x18] sm:$0xff] }
0x2740   :  { %v3220_v8 = vpop.eup %3219 }
0x2741   :  { %v2128_v15 = vmul.f32 %v3220_v8, %v2126_v13  ;;  %v2459_v13 = vlaneseq }
0x27a4   :  { %v2131_v10 = vpop.permute.xlu1 %2130 }
0x27a5   :  { %v2133_v11 = vmul.f32 %v3220_v8, %v2131_v10  ;;  %v2455_v10 = vld [vmem:[%s4077_s17] sm:$0x1] }
0x27a7   :  { %2135 = vrot.lane.b32.xlu0 %v2133_v11, %s3485_s8  ;;  %v2456_v11 = vadd.f32 1e-05, %v2455_v10 }
0x2819   :  { %v2136_v12 = vpop.permute.xlu0 %2135 }
0x281a   :  { %v2138_v14 = vadd.f32 %v2136_v12, %v2128_v15  ;;  %v2460_v15 = vshrl.u32 %v2459_v13, 7  ;;  %v2634_v12 = vld [vmem:[#allocation12] ss:$0 sm:$0xff] }
0x281c   :  { %3221 = vtanh.f32 %v2138_v14  ;;  %v2233_v39 = vrot.slane %v2138_v14, 6 }
0x2826   :  { %v3222_v16 = vpop.eup %3221 }
0x2827   :  { %2141 = vrot.lane.b32.xlu1 %v3222_v16, %s3485_s8 }
0x2899   :  { %v2142_v19 = vpop.permute.xlu1 %2141 }
0x289a   :  { %v2144_v17 = vmul.f32 %v3220_v8, %v2142_v19  ;;  %v3092_v8 = vpack.c.bf16 %v2484_v27, %v2483_v9 }
0x289c   :  { %v2146_v21 = vrot.slane %v2144_v17, 2 }
0x289e   :  { %2147 = vrot.lane.b32.xlu0 %v2146_v21, %s3486_s30  ;;  %v2636_v21 = vld [vmem:[#allocation17] ss:$0 sm:$0xff] }
0x2910   :  { %v2148_v22 = vpop.permute.xlu0 %2147 }
0x2911   :  { %2943 = vmatmul.mubr.msk.f32.vlgmr.msra.gmra.mrb[18].mxu0 %vm546_vm6, %v2148_v22 }
0x2912   :  { %2964 = vmatprep.mubr.msk.f32.mxu0 %vm3483_vm3, %v3484_v20 }
0x29e4   :  { %v2217_v23 = vpop.f32.mrb[18].mxu0 }
0x29e5   :  { %v2222_v24 = vrot.slane %v2217_v23, 4  ;;  %v2944_v25 = vpop.f32.mrb[19].mxu0 }
0x29e6   :  { %v2637_v25 = vld [vmem:[#allocation14] ss:$0 sm:$0xff] }
0x29e7   :  { %v2224_v26 = vadd.f32 %v2222_v24, %v3929_v29 }
0x29e9   :  { %3223 = vtanh.f32 %v2224_v26  ;;  %v2631_v30 = vmul.f32 -1.442695, %v2224_v26 }
0x29eb   :  { %3225 = vpow2.f32 %v2631_v30 }
0x29f3   :  { %v3224_v28 = vpop.eup %3223 }
0x29f4   :  { %2237 = vrot.lane.b32.xlu1 %v3224_v28, %s3485_s8  ;;  %v2638_v28 = vld [vmem:[#allocation15] ss:$0 sm:$0xff] }
0x29f5   :  { %v3226_v33 = vpop.eup %3225 }
0x29f6   :  { %v2228_v35 = vadd.f32 1.0, %v3226_v33 }
0x29f8   :  { %3227 = vrcp.f32 %v2228_v35  ;;  %v2639_v35 = vld [vmem:[%s4079_s19] ss:$0 sm:$0xff] }
0x2a02   :  { %v3228_v36 = vpop.eup %3227 }
0x2a03   :  { %v2235_v40 = vmul.f32 %v3228_v36, %v2233_v39 }
0x2a66   :  { %v2238_v37 = vpop.permute.xlu1 %2237 }
0x2a67   :  { %v2240_v38 = vmul.f32 %v3228_v36, %v2238_v37 }
0x2a69   :  { %2242 = vrot.lane.b32.xlu0 %v2240_v38, %s3485_s8 }
0x2adb   :  { %v2243_v41 = vpop.permute.xlu0 %2242 }
0x2adc   :  { %v2245_v42 = vadd.f32 %v2243_v41, %v2235_v40 }
0x2ade   :  { %3229 = vtanh.f32 %v2245_v42 }
0x2ae8   :  { %v3230_v43 = vpop.eup %3229 }
0x2ae9   :  { %2248 = vrot.lane.b32.xlu1 %v3230_v43, %s3485_s8 }
0x2b5b   :  { %v2249_v44 = vpop.permute.xlu1 %2248 }
0x2b5c   :  { %v2251_v45 = vmul.f32 %v3228_v36, %v2249_v44 }
0x2b5e   :  { %v2253_v31 = vrot.slane %v2251_v45, 4 }
0x2b60   :  { %2254 = vrot.lane.b32.xlu0 %v2253_v31, %s3486_s30 }
0x2bd2   :  { %v2255_v46 = vpop.permute.xlu0 %2254 }
0x2bd3   :  { %2954 = vmatmul.mubr.msk.f32.vlgmr.msra.gmra.mrb[18].mxu1 %vm546_vm6, %v2255_v46 }
0x2bd4   :  { %2975 = vmatprep.mubr.msk.f32.mxu1 %vm3483_vm3, %v3484_v20  ;;  %v2340_v20 = vrot.slane %v2245_v42, 6  ;;  %3090 = vmatpush3.bf16.msra.mxu1 %v3089_v7 }
0x2bd5   :  { %3091 = vmatprep.subr.bf16.mxu1 %v3482_v18 }
0x2bd8   :  { %3093 = vmatpush3.bf16.msra.mxu1 %v3092_v8 }
0x2ca6   :  { %v2324_v34 = vpop.f32.mrb[18].mxu1 }
0x2ca7   :  { %v2329_v47 = vrot.slane %v2324_v34, 2  ;;  %v2955_v49 = vpop.f32.mrb[19].mxu1 }
0x2ca9   :  { %v2331_v50 = vadd.f32 %v2329_v47, %v3929_v29  ;;  %v2359_v29 = vld [vmem:[%s4072_s12] sm:$0xff] }
0x2caa   :  { %v3083_v62 = vpack.c.bf16 %v2360_v61, %v2359_v29 }
0x2cab   :  { %3231 = vtanh.f32 %v2331_v50  ;;  %v2633_v52 = vmul.f32 -1.442695, %v2331_v50 }
0x2cac   :  { %3084 = vmatpush3.bf16.msra.mxu0 %v3083_v62 }
0x2cad   :  { %3233 = vpow2.f32 %v2633_v52  ;;  %3085 = vmatprep.subr.bf16.mxu0 %v3482_v18  ;;  %v2461_v18 = vsub.s32 0, %v2460_v15 }
0x2cb0   :  { %3087 = vmatpush3.bf16.msra.mxu0 %v3086_v0 }
0x2cb5   :  { %v3232_v51 = vpop.eup %3231 }
0x2cb6   :  { %2344 = vrot.lane.b32.xlu1 %v3232_v51, %s3485_s8 }
0x2cb7   :  { %v3234_v53 = vpop.eup %3233 }
0x2cb8   :  { %v2335_v54 = vadd.f32 1.0, %v3234_v53 }
0x2cba   :  { %3235 = vrcp.f32 %v2335_v54 }
0x2cc4   :  { %v3236_v55 = vpop.eup %3235 }
0x2cc5   :  { %v2342_v58 = vmul.f32 %v3236_v55, %v2340_v20 }
0x2d28   :  { %v2345_v56 = vpop.permute.xlu1 %2344 }
0x2d29   :  { %v2347_v57 = vmul.f32 %v3236_v55, %v2345_v56 }
0x2d2b   :  { %2349 = vrot.lane.b32.xlu0 %v2347_v57, %s3485_s8 }
0x2d9d   :  { %v2350_v59 = vpop.permute.xlu0 %2349 }
0x2d9e   :  { %v2352_v60 = vadd.f32 %v2350_v59, %v2342_v58 }
0x2da0   :  { %3237 = vtanh.f32 %v2352_v60 }
0x2da1   :  { %3239 = vrsqrt.f32 %v2456_v11 }
0x2daa   :  { %v3238_v1 = vpop.eup %3237 }
0x2dab   :  { %2355 = vrot.lane.b32.xlu1 %v3238_v1, %s3485_s8  ;;  %v3240_v14 = vpop.eup %3239 }
0x2dac   :  { %v2462_v23 = vrot.slane %v3240_v14, %v2461_v18 }
0x2e1d   :  { %v2356_v2 = vpop.permute.xlu1 %2355 }
0x2e1e   :  { %v2358_v3 = vmul.f32 %v3236_v55, %v2356_v2 }
0x2e20   :  { %v2371_v4 = vrot.slane %v2358_v3, 6 }
0x2e22   :  { %2372 = vrot.lane.b32.xlu0 %v2371_v4, %s3486_s30 }
0x2e94   :  { %v2373_v48 = vpop.permute.xlu0 %2372 }
0x2e95   :  { %2965 = vmatmul.mubr.msk.f32.vlgmr.msra.gmra.mrb[20].mxu0 %vm546_vm6, %v2373_v48 }
0x2f68   :  { %v2442_v16 = vpop.f32.mrb[20].mxu0 }
0x2f69   :  { %v2443_v19 = vadd.f32 %v2634_v12, %v2442_v16  ;;  %v2966_v17 = vpop.f32.mrb[21].mxu0 }
0x2f6b   :  { %v2446_v22 = vmax.f32 %v2443_v19, 0.0 }
0x2f6d   :  { %v2454_v24 = vsub.f32 %v2446_v22, %v2636_v21 }
0x2f6f   :  { %v2464_v26 = vmul.f32 %v2462_v23, %v2454_v24 }
0x2f71   :  { %v2472_v30 = vmul.f32 %v2637_v25, %v2464_v26 }
0x2f73   :  { %v2480_v33 = vadd.f32 %v2638_v28, %v2472_v30 }
0x2f75   :  { %2976 = vmatmul.mubr.msk.f32.vlgmr.msra.gmra.mrb[20].mxu1 %vm546_vm6, %v2480_v33 }
0x3048   :  { %v2561_v36 = vpop.f32.mrb[20].mxu1 }
0x3049   :  { %v2562_v37 = vadd.f32 %v2639_v35, %v2561_v36  ;;  %v2977_v38 = vpop.f32.mrb[21].mxu1 }
0x304b   :  { %2566 = vst.msk [vmem:[#allocation18] sm:$0x3] %vm2565_vm10, %v2562_v37 }
0x304c   :  { %3450 = shalt.err (!%p3447_p6)
}
0x304d   :  { %s3451_s6 = scalar_lea.hbm %s4080_s20, 32 }
0x304e   :  { %p3452_p7 = scmp.ne.s32.totalorder %s4080_s20, %s3451_s6  ;;  %p3455_p8 = scmp.lt.u32.totalorder %s3451_s6, %s4080_s20 }
0x3050   :  { %p3457_p9 = pnand %p3455_p8, %p3452_p7 }
0x3052   :  { %3460 = shalt.err (!%p3457_p9)
}
0x3053   :  { %2576 = dma.vmem_to_hbm [thread:$0]  %s2574_s28, 32, %s4080_s20, [#allocation5]  }
0x3054   :  { %3471 = dma.done.wait [#allocation5], 32  }
0x3055   :  { %3472 = vsyncadd [#allocation5], 4294967264 }
0x3056   :  { %2580 = vsyncpa [#allocation4], 1 }
0x3057   :  { %2581 = vsyncpa [#allocation7], 1 }
0x3058   :  { %2582 = vsyncpa [#allocation10], 1 }
0x3059   :  { %2583 = vsyncpa [#allocation13], 1 }
0x305a   :  { %2584 = vsyncpa [#allocation16], 1 }
0x305b   :  { %2585 = vsyncpa [#allocation5], 1 }

</bundles_post_ra>
